<compile_context>
chip_gen: v7x
topology: tpu7x:2x2x1
jax: 0.10.0
libtpu: 0.0.40
codegen_flags: <defaults>
</compile_context>

<pallas_src>
import functools
import math

import jax
import jax.numpy as jnp
import numpy as np
from jax import lax
from jax.experimental import pallas as pl
from jax.experimental.pallas import tpu as pltpu


def _round_up(n, m):
    return ((n + m - 1) // m) * m


def _pad_to(a, shape):
    pads = [(0, t - s) for s, t in zip(a.shape, shape)]
    return jnp.pad(a, pads)


# ----------------------------------------------------------------------------
# Pallas kernel  (grid = (batch_group, layer))
# ----------------------------------------------------------------------------
def posterior_encoder_kernel(
    len_ref,      # SMEM (B,)    int32  sequence lengths           (scalar prefetch)
    offs_ref,     # SMEM (L*K,)  int32  per-(layer, tap) offsets   (scalar prefetch)
    x_ref,        # (BG*Tp, Cin_p)      input features, group g
    eps_ref,      # (BG*Tp, Cp)         gaussian noise, group g
    pre_w_ref,    # (Cin_p, Hp)
    pre_b_ref,    # (1, Hp)
    wfg_ref,      # (K*Hp, 2*Hp)        fused [filter | gate] conv weights, layer l
    bfg_ref,      # (1, 2*Hp)
    wrs_ref,      # (Hp, 2*Hp)          fused [res | skip] 1x1 weights, layer l
    brs_ref,      # (1, 2*Hp)
    pw_ref,       # (Hp, 2*Cp)          proj weights [m | logs]
    pb_ref,       # (1, 2*Cp)
    out_ref,      # (BG*Tp, 3*Cp)       packed [z | m | logs]
    hpad_ref,     # scratch (BG*(Tp+2*PAD), Hp) f32   carried h with zero pad gaps
    skip_ref,     # scratch (BG*Tp, Hp) f32           running skip sum
    xtap_ref,     # scratch (BG*Tp, K*Hp) cdt         fused K-tap conv operand
    *,
    kernel_size: int,
    n_layers: int,
    pad_rows: int,
    batch_per_group: int,
    compute_dtype,
):
    f32 = jnp.float32
    cdt = compute_dtype
    g = pl.program_id(0)
    l = pl.program_id(1)
    K = kernel_size
    L = n_layers
    PAD = pad_rows
    BG = batch_per_group
    Hp = skip_ref.shape[-1]
    Tp = skip_ref.shape[0] // BG
    Cp = eps_ref.shape[-1]
    SEG = Tp + 2 * PAD

    # per-batch / stacked time masks: 1.0 where t < length(batch)
    t_idx = lax.broadcasted_iota(jnp.int32, (Tp, 1), 0)
    masks = [(t_idx < len_ref[g * BG + bb]).astype(f32) for bb in range(BG)]
    mask_all = masks[0] if BG == 1 else jnp.concatenate(masks, axis=0)   # (BG*Tp, 1)

    # ---- l == 0: pre 1x1 conv + mask, init carried h (zero only pad rows) ----
    @pl.when(l == 0)
    def _init():
        h0 = jnp.dot(x_ref[...].astype(cdt), pre_w_ref[...],
                     preferred_element_type=f32)
        h0 = (h0 + pre_b_ref[...].astype(f32)) * mask_all
        for bb in range(BG):
            if PAD > 0:
                zrow = jnp.zeros((PAD, Hp), f32)
                hpad_ref[bb * SEG:bb * SEG + PAD, :] = zrow
                hpad_ref[bb * SEG + PAD + Tp:(bb + 1) * SEG, :] = zrow
            hpad_ref[bb * SEG + PAD:bb * SEG + PAD + Tp, :] = \
                h0[bb * Tp:(bb + 1) * Tp, :]

    # ---- every layer: fused K-tap dilated gated conv ([filter|gate] merged) --
    # Each tap row is staged exactly once (with the bf16 cast) and consumed by
    # exactly one MXU contraction of depth K*Hp.
    for bb in range(BG):
        for k in range(K):
            off = offs_ref[l * K + k]                      # PAD + k*d_l - pad_l
            xtap_ref[bb * Tp:(bb + 1) * Tp, k * Hp:(k + 1) * Hp] = \
                hpad_ref[pl.ds(bb * SEG + off, Tp), :].astype(cdt)
    fg = (jnp.dot(xtap_ref[...], wfg_ref[...], preferred_element_type=f32)
          + bfg_ref[...].astype(f32))                       # (BG*Tp, 2*Hp)
    acts = (jnp.tanh(fg[:, :Hp]) * jax.nn.sigmoid(fg[:, Hp:])).astype(cdt)
    rs = (jnp.dot(acts, wrs_ref[...], preferred_element_type=f32)
          + brs_ref[...].astype(f32))                       # (BG*Tp, 2*Hp)

    # skip accumulation (layer 0 writes directly; no zero-fill store)
    sk = rs[:, Hp:]

    @pl.when(l == 0)
    def _skip_init():
        skip_ref[...] = sk

    @pl.when(l > 0)
    def _skip_acc():
        skip_ref[...] = skip_ref[...] + sk

    # residual path: skipped on the last layer (h never read again; the last
    # WN layer has no residual output in PyTorch).
    @pl.when(l < L - 1)
    def _residual():
        res = rs[:, :Hp]
        for bb in range(BG):
            r0 = bb * SEG + PAD
            hpad_ref[r0:r0 + Tp, :] = \
                (hpad_ref[r0:r0 + Tp, :] + res[bb * Tp:(bb + 1) * Tp, :]) * masks[bb]

    # ---- l == L-1: projection + reparameterization, lane-dense packed output -
    @pl.when(l == L - 1)
    def _finalize():
        wn = (skip_ref[...] * mask_all).astype(cdt)
        stats = (jnp.dot(wn, pw_ref[...], preferred_element_type=f32)
                 + pb_ref[...].astype(f32))                 # (BG*Tp, 2*Cp)
        m = stats[:, :Cp] * mask_all
        logs = stats[:, Cp:] * mask_all
        z = (m + eps_ref[...].astype(f32) * jnp.exp(logs)) * mask_all
        out_ref[:, 0 * Cp:1 * Cp] = z
        out_ref[:, 1 * Cp:2 * Cp] = m
        out_ref[:, 2 * Cp:3 * Cp] = logs


# ----------------------------------------------------------------------------
# Wrapper
# ----------------------------------------------------------------------------
def posterior_encoder(x, x_lengths, eps, params, *, out_channels, hidden_channels,
                      kernel_size, dilation_rate, n_layers,
                      param_dtype=jnp.bfloat16, num_batch_groups=None, lane=128):
    """x: (B, T, C_in) f32; x_lengths: (B,) int; eps: (B, T, C_out) f32 (randn_like(m))."""
    (pre_w, pre_b, in_w, in_b, rs_w, rs_b, proj_w, proj_b) = params
    B, T, c_in = x.shape
    H, K, L, C = hidden_channels, kernel_size, n_layers, out_channels
    Hp = _round_up(H, lane)
    Cp = _round_up(C, lane)
    Cin_p = _round_up(c_in, lane)
    Tp = _round_up(T, 16)            # sublane-friendly for f32 and bf16 operands

    # batch groups: keep a megacore 'parallel' axis of extent >= 2 when B allows,
    # while streaming weights only G (<= 2) times instead of B times.
    if num_batch_groups is None:
        num_batch_groups = 2 if (B >= 2 and B % 2 == 0) else 1
    G = num_batch_groups
    assert B % G == 0, "batch must divide evenly into num_batch_groups"
    BG = B // G

    # receptive-field padding of the carried h buffer (rounded to sublane = 8)
    pad_max = dilation_rate ** (L - 1) * (K - 1) // 2
    PAD = _round_up(pad_max, 8) if pad_max > 0 else 0
    SEG = Tp + 2 * PAD

    # per-(layer, tap) start offsets into one batch's h_pad segment
    offs_np = np.empty((L, K), np.int32)
    for li in range(L):
        d = dilation_rate ** li
        p = d * (K - 1) // 2
        for k in range(K):
            offs_np[li, k] = PAD + k * d - p
    offs = jnp.asarray(offs_np.reshape(-1))
    lengths = jnp.asarray(x_lengths, jnp.int32)

    cdt = param_dtype
    f32 = jnp.float32

    # --- split at channel H / C, lane-pad, re-merge (result slices stay lane
    #     aligned since Hp, Cp are multiples of 128); weights in param_dtype,
    #     biases kept f32 -------------------------------------------------------
    pre_w_p = _pad_to(pre_w, (Cin_p, Hp)).astype(cdt)
    pre_b_p = _pad_to(pre_b, (1, Hp)).astype(f32)

    wf = _pad_to(in_w[..., :H], (L, K, Hp, Hp))
    wg = _pad_to(in_w[..., H:], (L, K, Hp, Hp))
    w_fg = jnp.concatenate([wf, wg], axis=-1).reshape(L, K * Hp, 2 * Hp).astype(cdt)
    bfb = _pad_to(in_b[..., :H], (L, 1, Hp))
    bgb = _pad_to(in_b[..., H:], (L, 1, Hp))
    b_fg = jnp.concatenate([bfb, bgb], axis=-1).astype(f32)

    # last WN layer is skip-only in PyTorch; its residual half is never used by
    # the kernel (residual RMW skipped at l == L-1) -- zero it anyway so the
    # stacked layout is well-defined for any checkpoint.
    rw_res = _pad_to(rs_w[..., :H], (L, Hp, Hp)).at[L - 1].set(0.0)
    rw_skip = _pad_to(rs_w[..., H:], (L, Hp, Hp))
    w_rs = jnp.concatenate([rw_res, rw_skip], axis=-1).astype(cdt)
    rb_res = _pad_to(rs_b[..., :H], (L, 1, Hp)).at[L - 1].set(0.0)
    rb_skip = _pad_to(rs_b[..., H:], (L, 1, Hp))
    b_rs = jnp.concatenate([rb_res, rb_skip], axis=-1).astype(f32)

    pw = jnp.concatenate([_pad_to(proj_w[:, :C], (Hp, Cp)),
                          _pad_to(proj_w[:, C:], (Hp, Cp))], axis=-1).astype(cdt)
    pb = jnp.concatenate([_pad_to(proj_b[:, :C], (1, Cp)),
                          _pad_to(proj_b[:, C:], (1, Cp))], axis=-1).astype(f32)

    x2d = _pad_to(x.astype(f32), (B, Tp, Cin_p)).reshape(B * Tp, Cin_p)
    eps2d = _pad_to(eps.astype(f32), (B, Tp, Cp)).reshape(B * Tp, Cp)

    kernel = functools.partial(
        posterior_encoder_kernel,
        kernel_size=K, n_layers=L, pad_rows=PAD,
        batch_per_group=BG, compute_dtype=cdt)

    rows = BG * Tp

    def gmap(g, l, *_):     # blocks indexed by batch-group only
        return (g, 0)

    def lmap(g, l, *_):     # per-layer streamed weight blocks
        return (l, 0, 0)

    def cmap(*_):           # constant (broadcast) blocks
        return (0, 0)

    grid_spec = pltpu.PrefetchScalarGridSpec(
        num_scalar_prefetch=2,
        grid=(G, L),
        in_specs=[
            pl.BlockSpec((rows, Cin_p), gmap),            # x
            pl.BlockSpec((rows, Cp), gmap),               # eps
            pl.BlockSpec((Cin_p, Hp), cmap),              # pre_w
            pl.BlockSpec((1, Hp), cmap),                  # pre_b
            pl.BlockSpec((None, K * Hp, 2 * Hp), lmap),   # w_fg (streamed per layer)
            pl.BlockSpec((None, 1, 2 * Hp), lmap),        # b_fg
            pl.BlockSpec((None, Hp, 2 * Hp), lmap),       # w_rs
            pl.BlockSpec((None, 1, 2 * Hp), lmap),        # b_rs
            pl.BlockSpec((Hp, 2 * Cp), cmap),             # proj w
            pl.BlockSpec((1, 2 * Cp), cmap),              # proj b
        ],
        out_specs=pl.BlockSpec((rows, 3 * Cp), gmap),
        scratch_shapes=[
            pltpu.VMEM((BG * SEG, Hp), f32),   # h_pad (carried h + zero pad gaps)
            pltpu.VMEM((rows, Hp), f32),       # skip accumulator
            pltpu.VMEM((rows, K * Hp), cdt),   # fused K-tap conv operand
        ],
    )

    # explicit VMEM budget: ~85% of the device capacity (v7x: ~54 MiB cap,
    # v5e/v6e: ~109 MiB), falling back to a conservative 64 MiB.
    try:
        vmem_cap = int(pltpu.get_tpu_info().vmem_capacity_bytes)
    except Exception:
        vmem_cap = 64 * 1024 * 1024
    vmem_limit = int(0.85 * vmem_cap)

    packed = pl.pallas_call(
        kernel,
        out_shape=jax.ShapeDtypeStruct((B * Tp, 3 * Cp), f32),
        grid_spec=grid_spec,
        compiler_params=pltpu.CompilerParams(
            dimension_semantics=("parallel", "arbitrary"),
            vmem_limit_bytes=vmem_limit),
    )(lengths, offs, x2d, eps2d, pre_w_p, pre_b_p, w_fg, b_fg, w_rs, b_rs, pw, pb)

    packed = packed.reshape(B, Tp, 3 * Cp)[:, :T, :]
    z = packed[..., 0:C]
    m = packed[..., Cp:Cp + C]
    logs = packed[..., 2 * Cp:2 * Cp + C]
    t_idx = jnp.arange(T)[None, :, None]
    x_mask = (t_idx < lengths[:, None, None]).astype(x.dtype)
    return z, m, logs, x_mask


# ----------------------------------------------------------------------------
# Pure-JAX reference (same math, no Pallas) for correctness checking
# ----------------------------------------------------------------------------
def posterior_encoder_ref(x, x_lengths, eps, params, *, out_channels,
                          hidden_channels, kernel_size, dilation_rate, n_layers):
    (pre_w, pre_b, in_w, in_b, rs_w, rs_b, proj_w, proj_b) = params
    B, T, _ = x.shape
    H = hidden_channels

    t_idx = jnp.arange(T, dtype=jnp.float32)[None, :, None]
    mask = (t_idx < x_lengths.astype(jnp.float32)[:, None, None]).astype(jnp.float32)

    def shift(h, s):
        if s == 0:
            return h
        if s > 0:
            return jnp.concatenate(
                [h[:, s:, :], jnp.zeros((B, s, h.shape[2]), h.dtype)], axis=1)
        return jnp.concatenate(
            [jnp.zeros((B, -s, h.shape[2]), h.dtype), h[:, : T + s, :]], axis=1)

    h = (jnp.einsum("btc,ch->bth", x, pre_w) + pre_b) * mask
    skip = jnp.zeros_like(h)
    for l in range(n_layers):
        d = dilation_rate ** l
        pad = d * (kernel_size - 1) // 2
        x_in = jnp.zeros((B, T, 2 * H), jnp.float32)
        for k in range(kernel_size):
            x_in = x_in + jnp.einsum("bth,ho->bto", shift(h, k * d - pad), in_w[l, k])
        x_in = x_in + in_b[l]
        acts = jnp.tanh(x_in[..., :H]) * jax.nn.sigmoid(x_in[..., H:])
        rs = jnp.einsum("bth,ho->bto", acts, rs_w[l]) + rs_b[l]
        h = (h + rs[..., :H]) * mask
        skip = skip + rs[..., H:]
    wn_out = skip * mask
    stats = (jnp.einsum("bth,ho->bto", wn_out, proj_w) + proj_b) * mask
    m = stats[..., :out_channels]
    logs = stats[..., out_channels:]
    z = (m + eps * jnp.exp(logs)) * mask
    return z, m, logs, mask


# ----------------------------------------------------------------------------
# Main
# ----------------------------------------------------------------------------
if __name__ == "__main__":
    # module config (small, VITS-like but scaled down)
    B, T = 2, 16
    IN_CH, OUT_CH, HID = 8, 4, 16
    KSIZE, N_LAYERS = 5, 3

    key = jax.random.PRNGKey(0)
    ks = jax.random.split(key, 10)

    # deterministic synthetic parameters (weight_norm folded into the weights)
    pre_w = jax.random.normal(ks[0], (IN_CH, HID), jnp.float32) / math.sqrt(IN_CH)
    pre_b = jax.random.normal(ks[1], (1, HID), jnp.float32) * 0.1
    in_w = jax.random.normal(ks[2], (N_LAYERS, KSIZE, HID, 2 * HID),
                             jnp.float32) / math.sqrt(HID * KSIZE)
    in_b = jax.random.normal(ks[3], (N_LAYERS, 1, 2 * HID), jnp.float32) * 0.1
    rs_w = jax.random.normal(ks[4], (N_LAYERS, HID, 2 * HID),
                             jnp.float32) / math.sqrt(HID)
    rs_b = jax.random.normal(ks[5], (N_LAYERS, 1, 2 * HID), jnp.float32) * 0.1
    # last WN layer has only `hidden_channels` (skip) outputs in PyTorch.
    rs_w = rs_w.at[N_LAYERS - 1, :, :HID].set(0.0)
    rs_b = rs_b.at[N_LAYERS - 1, :, :HID].set(0.0)
    proj_w = jax.random.normal(ks[6], (HID, 2 * OUT_CH), jnp.float32) / math.sqrt(HID)
    proj_b = jax.random.normal(ks[7], (1, 2 * OUT_CH), jnp.float32) * 0.1
    params = (pre_w, pre_b, in_w, in_b, rs_w, rs_b, proj_w, proj_b)

    # inputs (kernel layout (B, T, C); PyTorch equivalent is x.transpose(1, 2))
    x = jax.random.normal(ks[8], (B, T, IN_CH), jnp.float32)
    eps = jax.random.normal(ks[9], (B, T, OUT_CH), jnp.float32)   # randn_like(m)
    x_lengths = jnp.array([T, T - 5], dtype=jnp.int32)

    # dilation_rate=1 is the VITS default; dilation_rate=2 exercises the
    # runtime per-layer tap offsets.  num_batch_groups 1 vs 2 exercises the
    # stacked-batch and megacore-parallel paths.
    for dil in (1, 2):
        cfg = dict(out_channels=OUT_CH, hidden_channels=HID, kernel_size=KSIZE,
                   dilation_rate=dil, n_layers=N_LAYERS)
        z_r, m_r, logs_r, mask_r = posterior_encoder_ref(x, x_lengths, eps, params, **cfg)

        # f32 weights: tight check against the pure-JAX reference
        for groups in (1, 2):
            z, m, logs, x_mask = posterior_encoder(
                x, x_lengths, eps, params, param_dtype=jnp.float32,
                num_batch_groups=groups, **cfg)
            jax.block_until_ready((z, m, logs, x_mask))
            np.testing.assert_allclose(np.asarray(z), np.asarray(z_r), rtol=1e-4, atol=1e-4)
            np.testing.assert_allclose(np.asarray(m), np.asarray(m_r), rtol=1e-4, atol=1e-4)
            np.testing.assert_allclose(np.asarray(logs), np.asarray(logs_r), rtol=1e-4, atol=1e-4)
            np.testing.assert_allclose(np.asarray(x_mask), np.asarray(mask_r), rtol=0, atol=0)

        # default bf16 weights/operands (f32 accumulation): loose sanity check
        zb, mb, logsb, _ = posterior_encoder(x, x_lengths, eps, params, **cfg)
        jax.block_until_ready((zb, mb, logsb))
        np.testing.assert_allclose(np.asarray(zb), np.asarray(z_r), rtol=2e-1, atol=2e-1)
        np.testing.assert_allclose(np.asarray(mb), np.asarray(m_r), rtol=2e-1, atol=2e-1)
        np.testing.assert_allclose(np.asarray(logsb), np.asarray(logs_r), rtol=2e-1, atol=2e-1)

    print("KERNEL_OK")
</pallas_src>

<mosaic_0001>
module attributes {stable_mosaic.version = 11 : i64} {
  func.func @posterior_encoder_kernel(%arg0: i32, %arg1: i32, %arg2: memref<2xi32, #tpu.memory_space<smem>>, %arg3: memref<15xi32, #tpu.memory_space<smem>>, %arg4: memref<32x128xf32, #tpu.memory_space<vmem>>, %arg5: memref<32x128xf32, #tpu.memory_space<vmem>>, %arg6: memref<128x128xf32, #tpu.memory_space<vmem>>, %arg7: memref<1x128xf32, #tpu.memory_space<vmem>>, %arg8: memref<1x640x256xf32, #tpu.memory_space<vmem>>, %arg9: memref<1x1x256xf32, #tpu.memory_space<vmem>>, %arg10: memref<1x128x256xf32, #tpu.memory_space<vmem>>, %arg11: memref<1x1x256xf32, #tpu.memory_space<vmem>>, %arg12: memref<128x256xf32, #tpu.memory_space<vmem>>, %arg13: memref<1x256xf32, #tpu.memory_space<vmem>>, %arg14: memref<32x384xf32, #tpu.memory_space<vmem>>, %arg15: memref<64x128xf32, #tpu.memory_space<vmem>>, %arg16: memref<32x128xf32, #tpu.memory_space<vmem>>, %arg17: memref<32x640xf32, #tpu.memory_space<vmem>>) attributes {dimension_semantics = [#tpu.dimension_semantics<parallel>, #tpu.dimension_semantics<arbitrary>], iteration_bounds = array<i64: 1, 3>, scalar_prefetch = 2 : i64, scratch_operands = 3 : i64, tpu.core_type = #tpu.core_type<tc>, window_params = [{transform_indices = @transform_0, window_bounds = array<i64: 32, 128>}, {transform_indices = @transform_1, window_bounds = array<i64: 32, 128>}, {pipeline_mode = #tpu.pipeline_mode<synchronous>, transform_indices = @transform_2, window_bounds = array<i64: 128, 128>}, {pipeline_mode = #tpu.pipeline_mode<synchronous>, transform_indices = @transform_3, window_bounds = array<i64: 1, 128>}, {transform_indices = @transform_4, window_bounds = array<i64: 1, 640, 256>}, {transform_indices = @transform_5, window_bounds = array<i64: 1, 1, 256>}, {transform_indices = @transform_6, window_bounds = array<i64: 1, 128, 256>}, {transform_indices = @transform_7, window_bounds = array<i64: 1, 1, 256>}, {pipeline_mode = #tpu.pipeline_mode<synchronous>, transform_indices = @transform_8, window_bounds = array<i64: 128, 256>}, {pipeline_mode = #tpu.pipeline_mode<synchronous>, transform_indices = @transform_9, window_bounds = array<i64: 1, 256>}, {transform_indices = @transform_10, window_bounds = array<i64: 32, 384>}]} {
    %0 = tpu.iota {dimensions = array<i32: 0>} : vector<16x1xi32>
    %c2_i32 = arith.constant 2 : i32
    %1 = arith.muli %arg0, %c2_i32 : i32
    %c0_i32 = arith.constant 0 : i32
    %2 = arith.addi %1, %c0_i32 : i32
    %3 = arith.index_cast %2 : i32 to index
    %4 = memref.load %arg2[%3] : memref<2xi32, #tpu.memory_space<smem>>
    %5 = vector.broadcast %4 : i32 to vector<16x1xi32>
    %6 = arith.cmpi slt, %0, %5 : vector<16x1xi32>
    %7 = arith.extui %6 : vector<16x1xi1> to vector<16x1xi32>
    %8 = arith.sitofp %7 : vector<16x1xi32> to vector<16x1xf32>
    %c2_i32_0 = arith.constant 2 : i32
    %9 = arith.muli %arg0, %c2_i32_0 : i32
    %c1_i32 = arith.constant 1 : i32
    %10 = arith.addi %9, %c1_i32 : i32
    %11 = arith.index_cast %10 : i32 to index
    %12 = memref.load %arg2[%11] : memref<2xi32, #tpu.memory_space<smem>>
    %13 = vector.broadcast %12 : i32 to vector<16x1xi32>
    %14 = arith.cmpi slt, %0, %13 : vector<16x1xi32>
    %15 = arith.extui %14 : vector<16x1xi1> to vector<16x1xi32>
    %16 = arith.sitofp %15 : vector<16x1xi32> to vector<16x1xf32>
    %17 = tpu.concatenate %8, %16 in 0 : vector<16x1xf32>, vector<16x1xf32> -> vector<32x1xf32>
    %c0_i32_1 = arith.constant 0 : i32
    %18 = arith.cmpi eq, %arg1, %c0_i32_1 : i32
    %19 = arith.extui %18 : i1 to i32
    %c0_i32_2 = arith.constant 0 : i32
    %20 = arith.cmpi ne, %19, %c0_i32_2 : i32
    scf.if %20 {
      %c0_77 = arith.constant 0 : index
      %c0_78 = arith.constant 0 : index
      %138 = vector.load %arg4[%c0_77, %c0_78] : memref<32x128xf32, #tpu.memory_space<vmem>>, vector<32x128xf32>
      %c0_79 = arith.constant 0 : index
      %c0_80 = arith.constant 0 : index
      %139 = vector.load %arg6[%c0_79, %c0_80] : memref<128x128xf32, #tpu.memory_space<vmem>>, vector<128x128xf32>
      %cst_81 = arith.constant dense<0.000000e+00> : vector<32x128xf32>
      %140 = tpu.matmul %138, %139, %cst_81 {dimension_numbers = #tpu.dot_dimension_numbers<[1], [0], [0], [1], [0, 0, 1, 1], [], []>} : vector<32x128xf32>, vector<128x128xf32>, vector<32x128xf32> -> vector<32x128xf32>
      %c0_82 = arith.constant 0 : index
      %c0_83 = arith.constant 0 : index
      %141 = vector.load %arg7[%c0_82, %c0_83] : memref<1x128xf32, #tpu.memory_space<vmem>>, vector<1x128xf32>
      %142 = vector.broadcast %141 : vector<1x128xf32> to vector<32x128xf32>
      %143 = arith.addf %140, %142 : vector<32x128xf32>
      %144 = vector.broadcast %17 : vector<32x1xf32> to vector<32x128xf32>
      %145 = arith.mulf %143, %144 : vector<32x128xf32>
      %cst_84 = arith.constant 0.000000e+00 : f32
      %146 = vector.broadcast %cst_84 : f32 to vector<8x128xf32>
      %c0_85 = arith.constant 0 : index
      %c0_86 = arith.constant 0 : index
      %147 = vector.load %arg15[%c0_85, %c0_86] : memref<64x128xf32, #tpu.memory_space<vmem>>, vector<8x128xf32>
      tpu.vector_store %arg15[%c0_85, %c0_86], %146 {strides = array<i32>} : memref<64x128xf32, #tpu.memory_space<vmem>>, vector<8x128xf32>,
      %c24 = arith.constant 24 : index
      %c0_87 = arith.constant 0 : index
      %148 = vector.load %arg15[%c24, %c0_87] : memref<64x128xf32, #tpu.memory_space<vmem>>, vector<8x128xf32>
      tpu.vector_store %arg15[%c24, %c0_87], %146 {strides = array<i32>} : memref<64x128xf32, #tpu.memory_space<vmem>>, vector<8x128xf32>,
      %149 = vector.extract_strided_slice %145 {offsets = [0, 0], sizes = [16, 128], strides = [1, 1]} : vector<32x128xf32> to vector<16x128xf32>
      %c8 = arith.constant 8 : index
      %c0_88 = arith.constant 0 : index
      %150 = vector.load %arg15[%c8, %c0_88] : memref<64x128xf32, #tpu.memory_space<vmem>>, vector<16x128xf32>
      tpu.vector_store %arg15[%c8, %c0_88], %149 {strides = array<i32>} : memref<64x128xf32, #tpu.memory_space<vmem>>, vector<16x128xf32>,
      %cst_89 = arith.constant 0.000000e+00 : f32
      %151 = vector.broadcast %cst_89 : f32 to vector<8x128xf32>
      %c32 = arith.constant 32 : index
      %c0_90 = arith.constant 0 : index
      %152 = vector.load %arg15[%c32, %c0_90] : memref<64x128xf32, #tpu.memory_space<vmem>>, vector<8x128xf32>
      tpu.vector_store %arg15[%c32, %c0_90], %151 {strides = array<i32>} : memref<64x128xf32, #tpu.memory_space<vmem>>, vector<8x128xf32>,
      %c56 = arith.constant 56 : index
      %c0_91 = arith.constant 0 : index
      %153 = vector.load %arg15[%c56, %c0_91] : memref<64x128xf32, #tpu.memory_space<vmem>>, vector<8x128xf32>
      tpu.vector_store %arg15[%c56, %c0_91], %151 {strides = array<i32>} : memref<64x128xf32, #tpu.memory_space<vmem>>, vector<8x128xf32>,
      %154 = vector.extract_strided_slice %145 {offsets = [16, 0], sizes = [16, 128], strides = [1, 1]} : vector<32x128xf32> to vector<16x128xf32>
      %c40 = arith.constant 40 : index
      %c0_92 = arith.constant 0 : index
      %155 = vector.load %arg15[%c40, %c0_92] : memref<64x128xf32, #tpu.memory_space<vmem>>, vector<16x128xf32>
      tpu.vector_store %arg15[%c40, %c0_92], %154 {strides = array<i32>} : memref<64x128xf32, #tpu.memory_space<vmem>>, vector<16x128xf32>,
    } else {
    }
    %c5_i32 = arith.constant 5 : i32
    %21 = arith.muli %arg1, %c5_i32 : i32
    %c0_i32_3 = arith.constant 0 : i32
    %22 = arith.addi %21, %c0_i32_3 : i32
    %23 = arith.index_cast %22 : i32 to index
    %24 = memref.load %arg3[%23] : memref<15xi32, #tpu.memory_space<smem>>
    %c0_i32_4 = arith.constant 0 : i32
    %25 = arith.addi %c0_i32_4, %24 : i32
    %26 = arith.index_cast %25 : i32 to index
    %c0 = arith.constant 0 : index
    %27 = vector.load %arg15[%26, %c0] : memref<64x128xf32, #tpu.memory_space<vmem>>, vector<16x128xf32>
    %c0_5 = arith.constant 0 : index
    %c0_6 = arith.constant 0 : index
    %28 = vector.load %arg17[%c0_5, %c0_6] : memref<32x640xf32, #tpu.memory_space<vmem>>, vector<16x128xf32>
    tpu.vector_store %arg17[%c0_5, %c0_6], %27 {strides = array<i32>} : memref<32x640xf32, #tpu.memory_space<vmem>>, vector<16x128xf32>,
    %c5_i32_7 = arith.constant 5 : i32
    %29 = arith.muli %arg1, %c5_i32_7 : i32
    %c1_i32_8 = arith.constant 1 : i32
    %30 = arith.addi %29, %c1_i32_8 : i32
    %31 = arith.index_cast %30 : i32 to index
    %32 = memref.load %arg3[%31] : memref<15xi32, #tpu.memory_space<smem>>
    %c0_i32_9 = arith.constant 0 : i32
    %33 = arith.addi %c0_i32_9, %32 : i32
    %34 = arith.index_cast %33 : i32 to index
    %c0_10 = arith.constant 0 : index
    %35 = vector.load %arg15[%34, %c0_10] : memref<64x128xf32, #tpu.memory_space<vmem>>, vector<16x128xf32>
    %c0_11 = arith.constant 0 : index
    %c128 = arith.constant 128 : index
    %36 = vector.load %arg17[%c0_11, %c128] : memref<32x640xf32, #tpu.memory_space<vmem>>, vector<16x128xf32>
    tpu.vector_store %arg17[%c0_11, %c128], %35 {strides = array<i32>} : memref<32x640xf32, #tpu.memory_space<vmem>>, vector<16x128xf32>,
    %c5_i32_12 = arith.constant 5 : i32
    %37 = arith.muli %arg1, %c5_i32_12 : i32
    %c2_i32_13 = arith.constant 2 : i32
    %38 = arith.addi %37, %c2_i32_13 : i32
    %39 = arith.index_cast %38 : i32 to index
    %40 = memref.load %arg3[%39] : memref<15xi32, #tpu.memory_space<smem>>
    %c0_i32_14 = arith.constant 0 : i32
    %41 = arith.addi %c0_i32_14, %40 : i32
    %42 = arith.index_cast %41 : i32 to index
    %c0_15 = arith.constant 0 : index
    %43 = vector.load %arg15[%42, %c0_15] : memref<64x128xf32, #tpu.memory_space<vmem>>, vector<16x128xf32>
    %c0_16 = arith.constant 0 : index
    %c256 = arith.constant 256 : index
    %44 = vector.load %arg17[%c0_16, %c256] : memref<32x640xf32, #tpu.memory_space<vmem>>, vector<16x128xf32>
    tpu.vector_store %arg17[%c0_16, %c256], %43 {strides = array<i32>} : memref<32x640xf32, #tpu.memory_space<vmem>>, vector<16x128xf32>,
    %c5_i32_17 = arith.constant 5 : i32
    %45 = arith.muli %arg1, %c5_i32_17 : i32
    %c3_i32 = arith.constant 3 : i32
    %46 = arith.addi %45, %c3_i32 : i32
    %47 = arith.index_cast %46 : i32 to index
    %48 = memref.load %arg3[%47] : memref<15xi32, #tpu.memory_space<smem>>
    %c0_i32_18 = arith.constant 0 : i32
    %49 = arith.addi %c0_i32_18, %48 : i32
    %50 = arith.index_cast %49 : i32 to index
    %c0_19 = arith.constant 0 : index
    %51 = vector.load %arg15[%50, %c0_19] : memref<64x128xf32, #tpu.memory_space<vmem>>, vector<16x128xf32>
    %c0_20 = arith.constant 0 : index
    %c384 = arith.constant 384 : index
    %52 = vector.load %arg17[%c0_20, %c384] : memref<32x640xf32, #tpu.memory_space<vmem>>, vector<16x128xf32>
    tpu.vector_store %arg17[%c0_20, %c384], %51 {strides = array<i32>} : memref<32x640xf32, #tpu.memory_space<vmem>>, vector<16x128xf32>,
    %c5_i32_21 = arith.constant 5 : i32
    %53 = arith.muli %arg1, %c5_i32_21 : i32
    %c4_i32 = arith.constant 4 : i32
    %54 = arith.addi %53, %c4_i32 : i32
    %55 = arith.index_cast %54 : i32 to index
    %56 = memref.load %arg3[%55] : memref<15xi32, #tpu.memory_space<smem>>
    %c0_i32_22 = arith.constant 0 : i32
    %57 = arith.addi %c0_i32_22, %56 : i32
    %58 = arith.index_cast %57 : i32 to index
    %c0_23 = arith.constant 0 : index
    %59 = vector.load %arg15[%58, %c0_23] : memref<64x128xf32, #tpu.memory_space<vmem>>, vector<16x128xf32>
    %c0_24 = arith.constant 0 : index
    %c512 = arith.constant 512 : index
    %60 = vector.load %arg17[%c0_24, %c512] : memref<32x640xf32, #tpu.memory_space<vmem>>, vector<16x128xf32>
    tpu.vector_store %arg17[%c0_24, %c512], %59 {strides = array<i32>} : memref<32x640xf32, #tpu.memory_space<vmem>>, vector<16x128xf32>,
    %c5_i32_25 = arith.constant 5 : i32
    %61 = arith.muli %arg1, %c5_i32_25 : i32
    %c0_i32_26 = arith.constant 0 : i32
    %62 = arith.addi %61, %c0_i32_26 : i32
    %63 = arith.index_cast %62 : i32 to index
    %64 = memref.load %arg3[%63] : memref<15xi32, #tpu.memory_space<smem>>
    %c32_i32 = arith.constant 32 : i32
    %65 = arith.addi %c32_i32, %64 : i32
    %66 = arith.index_cast %65 : i32 to index
    %c0_27 = arith.constant 0 : index
    %67 = vector.load %arg15[%66, %c0_27] : memref<64x128xf32, #tpu.memory_space<vmem>>, vector<16x128xf32>
    %c16 = arith.constant 16 : index
    %c0_28 = arith.constant 0 : index
    %68 = vector.load %arg17[%c16, %c0_28] : memref<32x640xf32, #tpu.memory_space<vmem>>, vector<16x128xf32>
    tpu.vector_store %arg17[%c16, %c0_28], %67 {strides = array<i32>} : memref<32x640xf32, #tpu.memory_space<vmem>>, vector<16x128xf32>,
    %c5_i32_29 = arith.constant 5 : i32
    %69 = arith.muli %arg1, %c5_i32_29 : i32
    %c1_i32_30 = arith.constant 1 : i32
    %70 = arith.addi %69, %c1_i32_30 : i32
    %71 = arith.index_cast %70 : i32 to index
    %72 = memref.load %arg3[%71] : memref<15xi32, #tpu.memory_space<smem>>
    %c32_i32_31 = arith.constant 32 : i32
    %73 = arith.addi %c32_i32_31, %72 : i32
    %74 = arith.index_cast %73 : i32 to index
    %c0_32 = arith.constant 0 : index
    %75 = vector.load %arg15[%74, %c0_32] : memref<64x128xf32, #tpu.memory_space<vmem>>, vector<16x128xf32>
    %c16_33 = arith.constant 16 : index
    %c128_34 = arith.constant 128 : index
    %76 = vector.load %arg17[%c16_33, %c128_34] : memref<32x640xf32, #tpu.memory_space<vmem>>, vector<16x128xf32>
    tpu.vector_store %arg17[%c16_33, %c128_34], %75 {strides = array<i32>} : memref<32x640xf32, #tpu.memory_space<vmem>>, vector<16x128xf32>,
    %c5_i32_35 = arith.constant 5 : i32
    %77 = arith.muli %arg1, %c5_i32_35 : i32
    %c2_i32_36 = arith.constant 2 : i32
    %78 = arith.addi %77, %c2_i32_36 : i32
    %79 = arith.index_cast %78 : i32 to index
    %80 = memref.load %arg3[%79] : memref<15xi32, #tpu.memory_space<smem>>
    %c32_i32_37 = arith.constant 32 : i32
    %81 = arith.addi %c32_i32_37, %80 : i32
    %82 = arith.index_cast %81 : i32 to index
    %c0_38 = arith.constant 0 : index
    %83 = vector.load %arg15[%82, %c0_38] : memref<64x128xf32, #tpu.memory_space<vmem>>, vector<16x128xf32>
    %c16_39 = arith.constant 16 : index
    %c256_40 = arith.constant 256 : index
    %84 = vector.load %arg17[%c16_39, %c256_40] : memref<32x640xf32, #tpu.memory_space<vmem>>, vector<16x128xf32>
    tpu.vector_store %arg17[%c16_39, %c256_40], %83 {strides = array<i32>} : memref<32x640xf32, #tpu.memory_space<vmem>>, vector<16x128xf32>,
    %c5_i32_41 = arith.constant 5 : i32
    %85 = arith.muli %arg1, %c5_i32_41 : i32
    %c3_i32_42 = arith.constant 3 : i32
    %86 = arith.addi %85, %c3_i32_42 : i32
    %87 = arith.index_cast %86 : i32 to index
    %88 = memref.load %arg3[%87] : memref<15xi32, #tpu.memory_space<smem>>
    %c32_i32_43 = arith.constant 32 : i32
    %89 = arith.addi %c32_i32_43, %88 : i32
    %90 = arith.index_cast %89 : i32 to index
    %c0_44 = arith.constant 0 : index
    %91 = vector.load %arg15[%90, %c0_44] : memref<64x128xf32, #tpu.memory_space<vmem>>, vector<16x128xf32>
    %c16_45 = arith.constant 16 : index
    %c384_46 = arith.constant 384 : index
    %92 = vector.load %arg17[%c16_45, %c384_46] : memref<32x640xf32, #tpu.memory_space<vmem>>, vector<16x128xf32>
    tpu.vector_store %arg17[%c16_45, %c384_46], %91 {strides = array<i32>} : memref<32x640xf32, #tpu.memory_space<vmem>>, vector<16x128xf32>,
    %c5_i32_47 = arith.constant 5 : i32
    %93 = arith.muli %arg1, %c5_i32_47 : i32
    %c4_i32_48 = arith.constant 4 : i32
    %94 = arith.addi %93, %c4_i32_48 : i32
    %95 = arith.index_cast %94 : i32 to index
    %96 = memref.load %arg3[%95] : memref<15xi32, #tpu.memory_space<smem>>
    %c32_i32_49 = arith.constant 32 : i32
    %97 = arith.addi %c32_i32_49, %96 : i32
    %98 = arith.index_cast %97 : i32 to index
    %c0_50 = arith.constant 0 : index
    %99 = vector.load %arg15[%98, %c0_50] : memref<64x128xf32, #tpu.memory_space<vmem>>, vector<16x128xf32>
    %c16_51 = arith.constant 16 : index
    %c512_52 = arith.constant 512 : index
    %100 = vector.load %arg17[%c16_51, %c512_52] : memref<32x640xf32, #tpu.memory_space<vmem>>, vector<16x128xf32>
    tpu.vector_store %arg17[%c16_51, %c512_52], %99 {strides = array<i32>} : memref<32x640xf32, #tpu.memory_space<vmem>>, vector<16x128xf32>,
    %c0_53 = arith.constant 0 : index
    %c0_54 = arith.constant 0 : index
    %101 = vector.load %arg17[%c0_53, %c0_54] : memref<32x640xf32, #tpu.memory_space<vmem>>, vector<32x640xf32>
    %c0_55 = arith.constant 0 : index
    %c0_56 = arith.constant 0 : index
    %c0_57 = arith.constant 0 : index
    %102 = vector.load %arg8[%c0_55, %c0_56, %c0_57] : memref<1x640x256xf32, #tpu.memory_space<vmem>>, vector<1x640x256xf32>
    %103 = vector.shape_cast %102 : vector<1x640x256xf32> to vector<640x256xf32>
    %cst = arith.constant dense<0.000000e+00> : vector<32x256xf32>
    %104 = tpu.matmul %101, %103, %cst {dimension_numbers = #tpu.dot_dimension_numbers<[1], [0], [0], [1], [0, 0, 1, 1], [], []>} : vector<32x640xf32>, vector<640x256xf32>, vector<32x256xf32> -> vector<32x256xf32>
    %c0_58 = arith.constant 0 : index
    %c0_59 = arith.constant 0 : index
    %c0_60 = arith.constant 0 : index
    %105 = vector.load %arg9[%c0_58, %c0_59, %c0_60] : memref<1x1x256xf32, #tpu.memory_space<vmem>>, vector<1x1x256xf32>
    %106 = vector.shape_cast %105 : vector<1x1x256xf32> to vector<1x256xf32>
    %107 = vector.broadcast %106 : vector<1x256xf32> to vector<32x256xf32>
    %108 = arith.addf %104, %107 : vector<32x256xf32>
    %109 = vector.extract_strided_slice %108 {offsets = [0, 0], sizes = [32, 128], strides = [1, 1]} : vector<32x256xf32> to vector<32x128xf32>
    %110 = math.tanh %109 : vector<32x128xf32>
    %111 = vector.extract_strided_slice %108 {offsets = [0, 128], sizes = [32, 128], strides = [1, 1]} : vector<32x256xf32> to vector<32x128xf32>
    %112 = arith.negf %111 : vector<32x128xf32>
    %113 = math.exp %112 : vector<32x128xf32>
    %cst_61 = arith.constant 1.000000e+00 : f32
    %114 = vector.broadcast %cst_61 : f32 to vector<32x128xf32>
    %115 = arith.addf %114, %113 : vector<32x128xf32>
    %116 = arith.divf %114, %115 : vector<32x128xf32>
    %117 = arith.mulf %110, %116 : vector<32x128xf32>
    %c0_62 = arith.constant 0 : index
    %c0_63 = arith.constant 0 : index
    %c0_64 = arith.constant 0 : index
    %118 = vector.load %arg10[%c0_62, %c0_63, %c0_64] : memref<1x128x256xf32, #tpu.memory_space<vmem>>, vector<1x128x256xf32>
    %119 = vector.shape_cast %118 : vector<1x128x256xf32> to vector<128x256xf32>
    %cst_65 = arith.constant dense<0.000000e+00> : vector<32x256xf32>
    %120 = tpu.matmul %117, %119, %cst_65 {dimension_numbers = #tpu.dot_dimension_numbers<[1], [0], [0], [1], [0, 0, 1, 1], [], []>} : vector<32x128xf32>, vector<128x256xf32>, vector<32x256xf32> -> vector<32x256xf32>
    %c0_66 = arith.constant 0 : index
    %c0_67 = arith.constant 0 : index
    %c0_68 = arith.constant 0 : index
    %121 = vector.load %arg11[%c0_66, %c0_67, %c0_68] : memref<1x1x256xf32, #tpu.memory_space<vmem>>, vector<1x1x256xf32>
    %122 = vector.shape_cast %121 : vector<1x1x256xf32> to vector<1x256xf32>
    %123 = vector.broadcast %122 : vector<1x256xf32> to vector<32x256xf32>
    %124 = arith.addf %120, %123 : vector<32x256xf32>
    %125 = vector.extract_strided_slice %124 {offsets = [0, 128], sizes = [32, 128], strides = [1, 1]} : vector<32x256xf32> to vector<32x128xf32>
    %c0_i32_69 = arith.constant 0 : i32
    %126 = arith.cmpi eq, %arg1, %c0_i32_69 : i32
    %127 = arith.extui %126 : i1 to i32
    %c0_i32_70 = arith.constant 0 : i32
    %128 = arith.cmpi ne, %127, %c0_i32_70 : i32
    scf.if %128 {
      %c0_77 = arith.constant 0 : index
      %c0_78 = arith.constant 0 : index
      %138 = vector.load %arg16[%c0_77, %c0_78] : memref<32x128xf32, #tpu.memory_space<vmem>>, vector<32x128xf32>
      tpu.vector_store %arg16[%c0_77, %c0_78], %125 {strides = array<i32>} : memref<32x128xf32, #tpu.memory_space<vmem>>, vector<32x128xf32>,
    } else {
    }
    %c0_i32_71 = arith.constant 0 : i32
    %129 = arith.cmpi sgt, %arg1, %c0_i32_71 : i32
    %130 = arith.extui %129 : i1 to i32
    %c0_i32_72 = arith.constant 0 : i32
    %131 = arith.cmpi ne, %130, %c0_i32_72 : i32
    scf.if %131 {
      %c0_77 = arith.constant 0 : index
      %c0_78 = arith.constant 0 : index
      %138 = vector.load %arg16[%c0_77, %c0_78] : memref<32x128xf32, #tpu.memory_space<vmem>>, vector<32x128xf32>
      %139 = arith.addf %138, %125 : vector<32x128xf32>
      %c0_79 = arith.constant 0 : index
      %c0_80 = arith.constant 0 : index
      %140 = vector.load %arg16[%c0_79, %c0_80] : memref<32x128xf32, #tpu.memory_space<vmem>>, vector<32x128xf32>
      tpu.vector_store %arg16[%c0_79, %c0_80], %139 {strides = array<i32>} : memref<32x128xf32, #tpu.memory_space<vmem>>, vector<32x128xf32>,
    } else {
    }
    %c2_i32_73 = arith.constant 2 : i32
    %132 = arith.cmpi slt, %arg1, %c2_i32_73 : i32
    %133 = arith.extui %132 : i1 to i32
    %c0_i32_74 = arith.constant 0 : i32
    %134 = arith.cmpi ne, %133, %c0_i32_74 : i32
    scf.if %134 {
      %138 = vector.extract_strided_slice %124 {offsets = [0, 0], sizes = [32, 128], strides = [1, 1]} : vector<32x256xf32> to vector<32x128xf32>
      %c8 = arith.constant 8 : index
      %c0_77 = arith.constant 0 : index
      %139 = vector.load %arg15[%c8, %c0_77] : memref<64x128xf32, #tpu.memory_space<vmem>>, vector<16x128xf32>
      %140 = vector.extract_strided_slice %138 {offsets = [0, 0], sizes = [16, 128], strides = [1, 1]} : vector<32x128xf32> to vector<16x128xf32>
      %141 = arith.addf %139, %140 : vector<16x128xf32>
      %142 = vector.broadcast %8 : vector<16x1xf32> to vector<16x128xf32>
      %143 = arith.mulf %141, %142 : vector<16x128xf32>
      %c8_78 = arith.constant 8 : index
      %c0_79 = arith.constant 0 : index
      %144 = vector.load %arg15[%c8_78, %c0_79] : memref<64x128xf32, #tpu.memory_space<vmem>>, vector<16x128xf32>
      tpu.vector_store %arg15[%c8_78, %c0_79], %143 {strides = array<i32>} : memref<64x128xf32, #tpu.memory_space<vmem>>, vector<16x128xf32>,
      %c40 = arith.constant 40 : index
      %c0_80 = arith.constant 0 : index
      %145 = vector.load %arg15[%c40, %c0_80] : memref<64x128xf32, #tpu.memory_space<vmem>>, vector<16x128xf32>
      %146 = vector.extract_strided_slice %138 {offsets = [16, 0], sizes = [16, 128], strides = [1, 1]} : vector<32x128xf32> to vector<16x128xf32>
      %147 = arith.addf %145, %146 : vector<16x128xf32>
      %148 = vector.broadcast %16 : vector<16x1xf32> to vector<16x128xf32>
      %149 = arith.mulf %147, %148 : vector<16x128xf32>
      %c40_81 = arith.constant 40 : index
      %c0_82 = arith.constant 0 : index
      %150 = vector.load %arg15[%c40_81, %c0_82] : memref<64x128xf32, #tpu.memory_space<vmem>>, vector<16x128xf32>
      tpu.vector_store %arg15[%c40_81, %c0_82], %149 {strides = array<i32>} : memref<64x128xf32, #tpu.memory_space<vmem>>, vector<16x128xf32>,
    } else {
    }
    %c2_i32_75 = arith.constant 2 : i32
    %135 = arith.cmpi eq, %arg1, %c2_i32_75 : i32
    %136 = arith.extui %135 : i1 to i32
    %c0_i32_76 = arith.constant 0 : i32
    %137 = arith.cmpi ne, %136, %c0_i32_76 : i32
    scf.if %137 {
      %c0_77 = arith.constant 0 : index
      %c0_78 = arith.constant 0 : index
      %138 = vector.load %arg16[%c0_77, %c0_78] : memref<32x128xf32, #tpu.memory_space<vmem>>, vector<32x128xf32>
      %139 = vector.broadcast %17 : vector<32x1xf32> to vector<32x128xf32>
      %140 = arith.mulf %138, %139 : vector<32x128xf32>
      %c0_79 = arith.constant 0 : index
      %c0_80 = arith.constant 0 : index
      %141 = vector.load %arg12[%c0_79, %c0_80] : memref<128x256xf32, #tpu.memory_space<vmem>>, vector<128x256xf32>
      %cst_81 = arith.constant dense<0.000000e+00> : vector<32x256xf32>
      %142 = tpu.matmul %140, %141, %cst_81 {dimension_numbers = #tpu.dot_dimension_numbers<[1], [0], [0], [1], [0, 0, 1, 1], [], []>} : vector<32x128xf32>, vector<128x256xf32>, vector<32x256xf32> -> vector<32x256xf32>
      %c0_82 = arith.constant 0 : index
      %c0_83 = arith.constant 0 : index
      %143 = vector.load %arg13[%c0_82, %c0_83] : memref<1x256xf32, #tpu.memory_space<vmem>>, vector<1x256xf32>
      %144 = vector.broadcast %143 : vector<1x256xf32> to vector<32x256xf32>
      %145 = arith.addf %142, %144 : vector<32x256xf32>
      %146 = vector.extract_strided_slice %145 {offsets = [0, 0], sizes = [32, 128], strides = [1, 1]} : vector<32x256xf32> to vector<32x128xf32>
      %147 = vector.broadcast %17 : vector<32x1xf32> to vector<32x128xf32>
      %148 = arith.mulf %146, %147 : vector<32x128xf32>
      %149 = vector.extract_strided_slice %145 {offsets = [0, 128], sizes = [32, 128], strides = [1, 1]} : vector<32x256xf32> to vector<32x128xf32>
      %150 = vector.broadcast %17 : vector<32x1xf32> to vector<32x128xf32>
      %151 = arith.mulf %149, %150 : vector<32x128xf32>
      %c0_84 = arith.constant 0 : index
      %c0_85 = arith.constant 0 : index
      %152 = vector.load %arg5[%c0_84, %c0_85] : memref<32x128xf32, #tpu.memory_space<vmem>>, vector<32x128xf32>
      %153 = math.exp %151 : vector<32x128xf32>
      %154 = arith.mulf %152, %153 : vector<32x128xf32>
      %155 = arith.addf %148, %154 : vector<32x128xf32>
      %156 = vector.broadcast %17 : vector<32x1xf32> to vector<32x128xf32>
      %157 = arith.mulf %155, %156 : vector<32x128xf32>
      %c0_86 = arith.constant 0 : index
      %c0_87 = arith.constant 0 : index
      %158 = vector.load %arg14[%c0_86, %c0_87] : memref<32x384xf32, #tpu.memory_space<vmem>>, vector<32x128xf32>
      tpu.vector_store %arg14[%c0_86, %c0_87], %157 {strides = array<i32>} : memref<32x384xf32, #tpu.memory_space<vmem>>, vector<32x128xf32>,
      %c0_88 = arith.constant 0 : index
      %c128_89 = arith.constant 128 : index
      %159 = vector.load %arg14[%c0_88, %c128_89] : memref<32x384xf32, #tpu.memory_space<vmem>>, vector<32x128xf32>
      tpu.vector_store %arg14[%c0_88, %c128_89], %148 {strides = array<i32>} : memref<32x384xf32, #tpu.memory_space<vmem>>, vector<32x128xf32>,
      %c0_90 = arith.constant 0 : index
      %c256_91 = arith.constant 256 : index
      %160 = vector.load %arg14[%c0_90, %c256_91] : memref<32x384xf32, #tpu.memory_space<vmem>>, vector<32x128xf32>
      tpu.vector_store %arg14[%c0_90, %c256_91], %151 {strides = array<i32>} : memref<32x384xf32, #tpu.memory_space<vmem>>, vector<32x128xf32>,
    } else {
    }
    return
  }
  func.func @transform_0(%arg0: i32, %arg1: i32, %arg2: memref<2xi32, #tpu.memory_space<smem>>, %arg3: memref<15xi32, #tpu.memory_space<smem>>) -> (i32, i32) {
    %c0_i32 = arith.constant 0 : i32
    %c0_i32_0 = arith.constant 0 : i32
    return %arg0, %c0_i32 : i32, i32
  }
  func.func @transform_1(%arg0: i32, %arg1: i32, %arg2: memref<2xi32, #tpu.memory_space<smem>>, %arg3: memref<15xi32, #tpu.memory_space<smem>>) -> (i32, i32) {
    %c0_i32 = arith.constant 0 : i32
    %c0_i32_0 = arith.constant 0 : i32
    return %arg0, %c0_i32 : i32, i32
  }
  func.func @transform_2(%arg0: i32, %arg1: i32, %arg2: memref<2xi32, #tpu.memory_space<smem>>, %arg3: memref<15xi32, #tpu.memory_space<smem>>) -> (i32, i32) {
    %c0_i32 = arith.constant 0 : i32
    %c0_i32_0 = arith.constant 0 : i32
    %c0_i32_1 = arith.constant 0 : i32
    return %c0_i32, %c0_i32_0 : i32, i32
  }
  func.func @transform_3(%arg0: i32, %arg1: i32, %arg2: memref<2xi32, #tpu.memory_space<smem>>, %arg3: memref<15xi32, #tpu.memory_space<smem>>) -> (i32, i32) {
    %c0_i32 = arith.constant 0 : i32
    %c0_i32_0 = arith.constant 0 : i32
    %c0_i32_1 = arith.constant 0 : i32
    return %c0_i32, %c0_i32_0 : i32, i32
  }
  func.func @transform_4(%arg0: i32, %arg1: i32, %arg2: memref<2xi32, #tpu.memory_space<smem>>, %arg3: memref<15xi32, #tpu.memory_space<smem>>) -> (i32, i32, i32) {
    %c0_i32 = arith.constant 0 : i32
    %c0_i32_0 = arith.constant 0 : i32
    %c0_i32_1 = arith.constant 0 : i32
    return %arg1, %c0_i32, %c0_i32_0 : i32, i32, i32
  }
  func.func @transform_5(%arg0: i32, %arg1: i32, %arg2: memref<2xi32, #tpu.memory_space<smem>>, %arg3: memref<15xi32, #tpu.memory_space<smem>>) -> (i32, i32, i32) {
    %c0_i32 = arith.constant 0 : i32
    %c0_i32_0 = arith.constant 0 : i32
    %c0_i32_1 = arith.constant 0 : i32
    return %arg1, %c0_i32, %c0_i32_0 : i32, i32, i32
  }
  func.func @transform_6(%arg0: i32, %arg1: i32, %arg2: memref<2xi32, #tpu.memory_space<smem>>, %arg3: memref<15xi32, #tpu.memory_space<smem>>) -> (i32, i32, i32) {
    %c0_i32 = arith.constant 0 : i32
    %c0_i32_0 = arith.constant 0 : i32
    %c0_i32_1 = arith.constant 0 : i32
    return %arg1, %c0_i32, %c0_i32_0 : i32, i32, i32
  }
  func.func @transform_7(%arg0: i32, %arg1: i32, %arg2: memref<2xi32, #tpu.memory_space<smem>>, %arg3: memref<15xi32, #tpu.memory_space<smem>>) -> (i32, i32, i32) {
    %c0_i32 = arith.constant 0 : i32
    %c0_i32_0 = arith.constant 0 : i32
    %c0_i32_1 = arith.constant 0 : i32
    return %arg1, %c0_i32, %c0_i32_0 : i32, i32, i32
  }
  func.func @transform_8(%arg0: i32, %arg1: i32, %arg2: memref<2xi32, #tpu.memory_space<smem>>, %arg3: memref<15xi32, #tpu.memory_space<smem>>) -> (i32, i32) {
    %c0_i32 = arith.constant 0 : i32
    %c0_i32_0 = arith.constant 0 : i32
    %c0_i32_1 = arith.constant 0 : i32
    return %c0_i32, %c0_i32_0 : i32, i32
  }
  func.func @transform_9(%arg0: i32, %arg1: i32, %arg2: memref<2xi32, #tpu.memory_space<smem>>, %arg3: memref<15xi32, #tpu.memory_space<smem>>) -> (i32, i32) {
    %c0_i32 = arith.constant 0 : i32
    %c0_i32_0 = arith.constant 0 : i32
    %c0_i32_1 = arith.constant 0 : i32
    return %c0_i32, %c0_i32_0 : i32, i32
  }
  func.func @transform_10(%arg0: i32, %arg1: i32, %arg2: memref<2xi32, #tpu.memory_space<smem>>, %arg3: memref<15xi32, #tpu.memory_space<smem>>) -> (i32, i32) {
    %c0_i32 = arith.constant 0 : i32
    %c0_i32_0 = arith.constant 0 : i32
    return %arg0, %c0_i32 : i32, i32
  }
}

</mosaic_0001>

<bundles_post_ra>
// kernel: tpu_custom_call.1
= control target key start
LH: loop header
LB: loop body
LE: loop exit
PB: predicated region body
PF: predicated region fallthrough
CT: control target
= control target key end

     0   :  { %s3833_s0 = inlined_call_operand.hbm [shape: s32[2], index: 0, kind: input, shape index: {}]   ;;  %s3834_s2 = inlined_call_operand.hbm [shape: f32[32,128], index: 2, kind: input, shape index: {}]   ;;  %s3835_s3 = inlined_call_operand.hbm [shape: f32[32,128], index: 3, kind: input, shape index: {}]   ;;  %s3836_s4 = inlined_call_operand.hbm [shape: f32[128,128], index: 4, kind: input, shape index: {}]   ;;  %s3837_s5 = inlined_call_operand.hbm [shape: f32[1,128], index: 5, kind: input, shape index: {}]   ;;  %s3838_s6 = inlined_call_operand.hbm [shape: f32[3,640,256], index: 6, kind: input, shape index: {}]   ;;  %s3839_s7 = inlined_call_operand.hbm [shape: f32[3,1,256], index: 7, kind: input, shape index: {}]   ;;  %s3840_s8 = inlined_call_operand.hbm [shape: f32[3,128,256], index: 8, kind: input, shape index: {}]   ;;  %s3841_s9 = inlined_call_operand.hbm [shape: f32[3,1,256], index: 9, kind: input, shape index: {}]   ;;  %s3842_s10 = inlined_call_operand.hbm [shape: f32[128,256], index: 10, kind: input, shape index: {}]   ;;  %s3843_s11 = inlined_call_operand.hbm [shape: f32[1,256], index: 11, kind: input, shape index: {}]   ;;  %s3844_s12 = inlined_call_operand.hbm [shape: f32[32,384], index: 12, kind: output, shape index: {}]   ;;  %s3845_s1 = inlined_call_operand.hbm [shape: s32[15], index: 1, kind: input, shape index: {}]  }
   0x1   :  { %3877 = sst [smem:[#allocation38_spill]] %s3834_s2  ;;  %s2560_s23 = scalar_lea.hbm %s3833_s0, 16 }
   0x2   :  { %3878 = sst [smem:[#allocation39_spill]] %s3835_s3  ;;  %p2561_p0 = scmp.ne.s32.totalorder %s3833_s0, %s2560_s23 }
   0x3   :  { %3879 = sst [smem:[#allocation40_spill]] %s3836_s4  ;;  %p2564_p1 = scmp.lt.u32.totalorder %s2560_s23, %s3833_s0 }
   0x4   :  { %3880 = sst [smem:[#allocation41_spill]] %s3838_s6 }
   0x5   :  { %3881 = sst [smem:[#allocation42_spill]] %s3844_s12  ;;  %p2566_p2 = pnand %p2564_p1, %p2561_p0 }
   0x7   :  { %2569 = shalt.err (!%p2566_p2)  }
   0x8   :  { %s2972_s28 = smov [#allocation6]   ;;  %s2570_s15 = scalar_lea.hbm %s3845_s1, 16 }
   0x9   :  { %18 = dma.hbm_to_smem %s3833_s0, 16, %s2972_s28, [#allocation5] }
   0xa   :  { %p2571_p3 = scmp.ne.s32.totalorder %s3845_s1, %s2570_s15  ;;  %p2574_p4 = scmp.lt.u32.totalorder %s2570_s15, %s3845_s1 }
   0xc   :  { %p2576_p5 = pnand %p2574_p4, %p2571_p3 }
   0xe   :  { %2579 = shalt.err (!%p2576_p5)  }
   0xf   :  { %s2973_s20 = smov [#allocation7]  }
  0x10   :  { %20 = dma.hbm_to_smem %s3845_s1, 16, %s2973_s20, [#allocation5] }
  0x11   :  { %2918 = dma.done.wait [#allocation5], 32 }
  0x12   :  { %2919 = vsyncadd [#allocation5], 4294967264 }
  0x13   :  { %22 = sfence }
  0x14   :  { %23 = vsyncpa [#allocation9], 0 }
  0x15   :  { %24 = vsyncpa [#allocation12], 0 }
  0x16   :  { %25 = vsyncpa [#allocation15], 0 }
  0x17   :  { %26 = vsyncpa [#allocation10], 0  ;;  %s3085_s0 = smov 0   ;;  %s3087_s23 = smov 0  }
  0x18   :  { %s3089_s24 = smov 0   ;;  %s3091_s25 = smov 0  }
  0x19   :  { %s3093_s26 = smov 0   ;;  %s3095_s27 = smov 0  }
  0x1a LB: > { %3882 = sst [smem:[#allocation31_spill]] %s2954_s23  ;;  %s3116_s1 = sadd.s32 4294967295, %s2970_s27   ;;  %s2970_s27 = sphi %s3095_s27, %s32_s27   ;;  %s2966_s26 = sphi %s3093_s26, %s3940_s26   ;;  %s2962_s25 = sphi %s3091_s25, %s3939_s25   ;;  %s2958_s24 = sphi %s3089_s24, %s3937_s24   ;;  %s2954_s23 = sphi %s3087_s23, %s3936_s23   ;;  %s2950_s0 = sphi %s3085_s0, %s3935_s0  }
  0x1b   : > { %3883 = sst [smem:[#allocation32_spill]] %s2958_s24  ;;  %p1922_p6 = scmp.ge.s32.totalorder %s2970_s27, 1 }
  0x1c   : > { %3884 = sst [smem:[#allocation33_spill]] %s2962_s25  ;;  %p3846_p7 = scmp.eq.s32.totalorder %s3116_s1, 0 }
  0x1d   : > { %3885 = sst [smem:[#allocation34_spill]] %s2970_s27  ;;  %p315_p8 = scmp.lt.s32.totalorder %s2970_s27, 4 }
  0x1e   : > { %s2974_s29 = smov [#allocation8]   ;;  %s3888_s2 = sld [smem:[#allocation38_spill]] }
  0x1f   : > { %p3121_p9 = pnand %p1922_p6, %p315_p8  ;;  %s330_s30 = sshll.u32 %s2974_s29, 4  ;;  %s331_s30 = int_to_ptr.vmem [resolvable:$true] %s330_s30 }
  0x21   : > { %s3886_s28 = scalar_select %p3121_p9, 1, 0 }
  0x22   : > { %p2391_p10 = pneg %p3121_p9 }
  0x24   : > { %p3129_p11 = pnand %p2391_p10, %p3846_p7  ;;  %s2580_s16 = scalar_lea.hbm %s3888_s2, 512 }
  0x25   : > { %p2581_p12 = scmp.ne.s32.totalorder %s3888_s2, %s2580_s16  ;;  %p2587_p2 = scmp.lt.u32.totalorder %s2580_s16, %s3888_s2 }
  0x26   : > { %s3887_s13 = scalar_select %p3129_p11, 1, 0 }
  0x27   : > { %p3141_p13 = pneg %p3129_p11 }
  0x29   : > { %s3889_s19 = scalar_select %p3141_p13, 1, 0 }
  0x2a   : > { %p2583_p0 = pnand %p3141_p13, %p2581_p12 }
  0x2c   : > { %p2584_p1 = pneg %p2583_p0 }
  0x2e   : > { %p2589_p3 = pnand %p2587_p2, %p2584_p1 }
  0x30   : > { %2592 = shalt.err (!%p2589_p3)
}
  0x31   : > { %s2593_s22 = scalar_lea.vmem %s331_s30, 512  ;;  %p2601_p8 = scmp.lt.s32.totalorder %s331_s30, %s331_s30 }
  0x32   : > { %p2594_p4 = scmp.ne.s32.totalorder %s331_s30, %s2593_s22  ;;  %p2602_p10 = scmp.lt.s32.totalorder %s2593_s22, %s2593_s22 }
  0x34   : > { %p2596_p5 = pnand %p2594_p4, %p3141_p13  ;;  %p2603_p7 = por %p2602_p10, %p2601_p8 }
  0x36   : > { %p2597_p6 = pneg %p2596_p5 }
  0x38   : > { %p2604_p9 = pnand %p2603_p7, %p2597_p6 }
  0x3a   : > { %2607 = shalt.err (!%p2604_p9)
}
  0x3b   : > { %s3848_s29 = smov 128   ;;  %s3850_s14 = smov 8  }
  0x3c   : > { %2394 = dma.hbm_to_vmem [thread:$0]  (!%p3129_p11), %s3888_s2, 512, %s331_s30, [#allocation9], %s3848_s29, %s3848_s29, %s3850_s14  }
  0x3d   : > { %s41_s17 = sadd.s32 1, %s2966_s26  ;;  %s145_s18 = sadd.s32 1, %s2958_s24 }
  0x3e   : > { %p42_p7 = scmp.ge.s32.totalorder %s41_s17, 3  ;;  %p152_p9 = scmp.ne.s32.totalorder %s2958_s24, %s2954_s23 }
  0x3f   : > { %p153_p12 = scmp.eq.s32.totalorder %s2970_s27, 0  ;;  %p158_p1 = scmp.ne.s32.totalorder %s2954_s23, %s2950_s0 }
  0x40   : > { %s3942_s17 = smov (%p42_p7, %s41_s17), 0  ;;  %p3891_p3 = scmp.eq.s32.totalorder %s3116_s1, 0 }
  0x41   : > { %3890 = sst [smem:[#allocation35_spill]] %s3942_s17  ;;  %p154_p0 = por %p153_p12, %p152_p9 }
  0x42   : > { %s142_s20 = ssub.s32 %s2966_s26, %s3942_s17  ;;  %p3173_p4 = por %p3891_p3, %p158_p1 }
  0x43   : > { %p143_p2 = scmp.eq.s32.totalorder %s142_s20, 0  ;;  %p2429_p5 = scmp.lt.s32.totalorder %s2970_s27, 3 }
  0x44   : > { %s3892_s21 = scalar_select %p3173_p4, 1, 0 }
  0x45   : > { %s3179_s30 = scalar_select %p143_p2, %s2958_s24, %s145_s18  }
  0x46   : > { %3893 = sst [smem:[#allocation36_spill]] %s3892_s21  ;;  %s408_s22 = sand.u32 1, %s2970_s27  }
  0x47   : > { %3894 = sst [smem:[#allocation37_spill]] %s3179_s30  ;;  %s3183_s15 = sand.u32 1, %s2958_s24  }
  0x48   : > { %s2352_s16 = smul.u32 1280, %s3183_s15  ;;  %p3187_p6 = pnand %p2429_p5, %p154_p0 }
  0x49   : > { %s2353_s29 = smul.u32 20480, %s2966_s26  ;;  %s3896_s6 = sld [smem:[#allocation41_spill]] }
  0x4a   : > { %s3895_s14 = scalar_select %p3187_p6, 1, 0 }
  0x4b   : > { %s412_s18 = scalar_lea.vmem [#allocation16], %s2352_s16  ;;  %s3198_s30 = scalar_lea.sflag [#allocation9], %s408_s22 }
  0x4c   : > { %s419_s17 = sshll.u32 %s412_s18, 4  ;;  %p3204_p10 = pneg %p3187_p6  ;;  %s3196_s17 = int_to_ptr.vmem [resolvable:$true] %s419_s17 }
  0x4e   : > { %s3897_s27 = scalar_select %p3204_p10, 1, 0 }
  0x4f   : > { %s3194_s2 = scalar_lea.hbm %s3896_s6, %s2353_s29  ;;  %s2613_s16 = scalar_lea.hbm %s3896_s6, 61440 }
  0x50   : > { %s2608_s24 = scalar_lea.hbm %s3194_s2, 20480  ;;  %p2614_p12 = scmp.lt.u32.totalorder %s3194_s2, %s3896_s6 }
  0x51   : > { %p2609_p8 = scmp.ne.s32.totalorder %s3194_s2, %s2608_s24  ;;  %p2615_p0 = scmp.lt.u32.totalorder %s2613_s16, %s2608_s24 }
  0x52   : > { %p2617_p2 = scmp.lt.u32.totalorder %s2608_s24, %s3194_s2 }
  0x53   : > { %p2611_p7 = pnand %p3204_p10, %p2609_p8  ;;  %p2616_p1 = por %p2615_p0, %p2614_p12 }
  0x55   : > { %p2612_p9 = pneg %p2611_p7  ;;  %p2618_p3 = por %p2617_p2, %p2616_p1 }
  0x57   : > { %p2619_p5 = pnand %p2618_p3, %p2612_p9 }
  0x59   : > { %2622 = shalt.err (!%p2619_p5)
}
  0x5a   : > { %s2623_s22 = scalar_lea.vmem %s3196_s17, 20480  ;;  %s2977_s29 = smov [#allocation16]  }
  0x5b   : > { %p2624_p8 = scmp.ne.s32.totalorder %s3196_s17, %s2623_s22  ;;  %s2628_s0 = sshll.u32 %s2977_s29, 4  ;;  %s2629_s0 = int_to_ptr.vmem [resolvable:$false] %s2628_s0 }
  0x5c   : > { %s2630_s20 = scalar_lea.vmem %s2629_s0, 40960  ;;  %p2631_p11 = scmp.lt.s32.totalorder %s3196_s17, %s2629_s0 }
  0x5d   : > { %p2626_p7 = pnand %p2624_p8, %p3204_p10  ;;  %p2632_p13 = scmp.lt.s32.totalorder %s2630_s20, %s2623_s22 }
  0x5f   : > { %p2627_p4 = pneg %p2626_p7  ;;  %p2633_p12 = por %p2632_p13, %p2631_p11 }
  0x61   : > { %p2634_p0 = pnand %p2633_p12, %p2627_p4 }
  0x63   : > { %2637 = shalt.err (!%p2634_p0)
}
  0x64   : > { %s3868_s24 = smov 256   ;;  %s3870_s16 = smov 16  }
  0x65   : > { %2413 = dma.hbm_to_vmem [thread:$0]  (!%p3187_p6), %s3194_s2, 20480, %s3196_s17, %s3198_s30, %s3868_s24, %s3868_s24, %s3870_s16  }
  0x66   : > { %s2980_s18 = smov [#allocation11]   ;;  %s3873_s0 = sshll.u32 %s3183_s15, 1 }
  0x67   : > { %s346_s29 = sshll.u32 %s2980_s18, 4  ;;  %s3898_s3 = sld [smem:[#allocation39_spill]]  ;;  %s347_s29 = int_to_ptr.vmem [resolvable:$true] %s346_s29 }
  0x68   : > { %p3899_p13 = scmp.ne.s32.totalorder %s3889_s19, 0 }
  0x6d   : > { %s2638_s6 = scalar_lea.hbm %s3898_s3, 512 }
  0x6e   : > { %p2639_p11 = scmp.ne.s32.totalorder %s3898_s3, %s2638_s6  ;;  %p2645_p1 = scmp.lt.u32.totalorder %s2638_s6, %s3898_s3 }
  0x70   : > { %p2641_p4 = pnand %p2639_p11, %p3899_p13 }
  0x72   : > { %p2642_p9 = pneg %p2641_p4 }
  0x74   : > { %p2647_p2 = pnand %p2645_p1, %p2642_p9 }
  0x76   : > { %2650 = shalt.err (!%p2647_p2)
}
  0x77   : > { %s2651_s2 = scalar_lea.vmem %s347_s29, 512  ;;  %p2659_p7 = scmp.lt.s32.totalorder %s347_s29, %s347_s29 }
  0x78   : > { %p2652_p3 = scmp.ne.s32.totalorder %s347_s29, %s2651_s2  ;;  %p2660_p12 = scmp.lt.s32.totalorder %s2651_s2, %s2651_s2 }
  0x7a   : > { %p2654_p5 = pnand %p2652_p3, %p3899_p13  ;;  %p2661_p0 = por %p2660_p12, %p2659_p7 }
  0x7c   : > { %p2655_p8 = pneg %p2654_p5 }
  0x7e   : > { %p2662_p6 = pnand %p2661_p0, %p2655_p8 }
  0x80   : > { %2665 = shalt.err (!%p2662_p6)
}
  0x81   : > { %p3900_p11 = scmp.ne.s32.totalorder %s3887_s13, 0  ;;  %s3901_s12 = smov 8  }
  0x82   : > { %s3902_s25 = smov 128   ;;  %s1979_s17 = sshll.u32 %s2966_s26, 5 }
  0x83   : > { %2397 = dma.hbm_to_vmem [thread:$0]  (!%p3900_p11), %s3898_s3, 512, %s347_s29, [#allocation12], %s3902_s25, %s3902_s25, %s3901_s12  }
  0x84   : > { %s433_s21 = scalar_lea.vmem [#allocation17], %s3873_s0  ;;  %s439_s2 = scalar_lea.hbm %s3839_s7, %s1979_s17 }
  0x85   : > { %s441_s18 = sshll.u32 %s433_s21, 4  ;;  %s2666_s24 = scalar_lea.hbm %s439_s2, 32  ;;  %s442_s18 = int_to_ptr.vmem [resolvable:$true] %s441_s18 }
  0x86   : > { %p2667_p6 = scmp.ne.s32.totalorder %s439_s2, %s2666_s24  ;;  %s2671_s16 = scalar_lea.hbm %s3839_s7, 96 }
  0x87   : > { %p2672_p1 = scmp.lt.u32.totalorder %s439_s2, %s3839_s7  ;;  %p2673_p2 = scmp.lt.u32.totalorder %s2671_s16, %s2666_s24 }
  0x88   : > { %p2669_p4 = pnand %p2667_p6, %p3204_p10  ;;  %p2675_p5 = scmp.lt.u32.totalorder %s2666_s24, %s439_s2 }
  0x89   : > { %p2674_p3 = por %p2673_p2, %p2672_p1 }
  0x8a   : > { %p2670_p9 = pneg %p2669_p4 }
  0x8b   : > { %p2676_p8 = por %p2675_p5, %p2674_p3 }
  0x8d   : > { %p2677_p7 = pnand %p2676_p8, %p2670_p9 }
  0x8f   : > { %2680 = shalt.err (!%p2677_p7)
}
  0x90   : > { %s2681_s21 = scalar_lea.vmem %s442_s18, 32  ;;  %s2981_s22 = smov [#allocation17]  }
  0x91   : > { %p2682_p12 = scmp.ne.s32.totalorder %s442_s18, %s2681_s21  ;;  %s2686_s20 = sshll.u32 %s2981_s22, 4  ;;  %s2687_s20 = int_to_ptr.vmem [resolvable:$false] %s2686_s20 }
  0x92   : > { %s2688_s23 = scalar_lea.vmem %s2687_s20, 64  ;;  %p2689_p4 = scmp.lt.s32.totalorder %s442_s18, %s2687_s20 }
  0x93   : > { %p2684_p0 = pnand %p2682_p12, %p3204_p10  ;;  %p2690_p11 = scmp.lt.s32.totalorder %s2688_s23, %s2681_s21 }
  0x95   : > { %p2685_p6 = pneg %p2684_p0  ;;  %p2691_p13 = por %p2690_p11, %p2689_p4 }
  0x97   : > { %p2692_p1 = pnand %p2691_p13, %p2685_p6 }
  0x99   : > { %2695 = shalt.err (!%p2692_p1)
}
  0x9a   : > { %p3903_p2 = scmp.ne.s32.totalorder %s3895_s14, 0  ;;  %s2982_s3 = smov [#allocation13]  }
  0x9b   : > { %s359_s24 = sshll.u32 %s2982_s3, 4  ;;  %s2983_s16 = smov [#allocation14]   ;;  %s360_s24 = int_to_ptr.vmem [resolvable:$true] %s359_s24 }
  0x9c   : > { %2416 = dma.hbm_to_vmem [thread:$0]  (!%p3903_p2), %s439_s2, 32, %s442_s18, %s3198_s30  }
  0x9d   : > { %s373_s6 = sshll.u32 %s2983_s16, 4  ;;  %s3904_s4 = sld [smem:[#allocation40_spill]]  ;;  %s3274_s6 = int_to_ptr.vmem [resolvable:$true] %s373_s6 }
  0x9e   : > { %p3905_p11 = scmp.ne.s32.totalorder %s3889_s19, 0 }
  0xa3   : > { %s2696_s20 = scalar_lea.hbm %s3904_s4, 2048 }
  0xa4   : > { %p2697_p13 = scmp.ne.s32.totalorder %s3904_s4, %s2696_s20  ;;  %p2703_p5 = scmp.lt.u32.totalorder %s2696_s20, %s3904_s4 }
  0xa6   : > { %p2699_p9 = pnand %p2697_p13, %p3905_p11 }
  0xa8   : > { %p2700_p3 = pneg %p2699_p9 }
  0xaa   : > { %p2705_p8 = pnand %p2703_p5, %p2700_p3 }
  0xac   : > { %2708 = shalt.err (!%p2705_p8)
}
  0xad   : > { %s2709_s2 = scalar_lea.vmem %s360_s24, 2048  ;;  %p2717_p6 = scmp.lt.s32.totalorder %s360_s24, %s360_s24 }
  0xae   : > { %p2710_p7 = scmp.ne.s32.totalorder %s360_s24, %s2709_s2  ;;  %p2718_p4 = scmp.lt.s32.totalorder %s2709_s2, %s2709_s2 }
  0xb0   : > { %p2712_p12 = pnand %p2710_p7, %p3905_p11  ;;  %p2719_p1 = por %p2718_p4, %p2717_p6 }
  0xb2   : > { %p2713_p0 = pneg %p2712_p12 }
  0xb4   : > { %p2720_p2 = pnand %p2719_p1, %p2713_p0 }
  0xb6   : > { %2723 = shalt.err (!%p2720_p2)
}
  0xb7   : > { %p3906_p13 = scmp.ne.s32.totalorder %s3887_s13, 0  ;;  %s2724_s22 = scalar_lea.hbm %s3837_s5, 16 }
  0xb8   : > { %p2725_p9 = scmp.ne.s32.totalorder %s3837_s5, %s2724_s22  ;;  %p2731_p5 = scmp.lt.u32.totalorder %s2724_s22, %s3837_s5 }
  0xb9   : > { %2400 = dma.hbm_to_vmem [thread:$0]  (!%p3906_p13), %s3904_s4, 2048, %s360_s24, [#allocation12], %s3902_s25, %s3902_s25, %s3901_s12  }
  0xba   : > { %p2727_p2 = pnand %p2725_p9, %p3905_p11 }
  0xbc   : > { %p2728_p3 = pneg %p2727_p2 }
  0xbe   : > { %p2733_p8 = pnand %p2731_p5, %p2728_p3 }
  0xc0   : > { %2736 = shalt.err (!%p2733_p8)
}
  0xc1   : > { %s2737_s12 = scalar_lea.vmem %s3274_s6, 16  ;;  %s2744_s25 = scalar_lea.vmem %s3274_s6, 32 }
  0xc2   : > { %p2738_p7 = scmp.ne.s32.totalorder %s3274_s6, %s2737_s12  ;;  %p2745_p6 = scmp.lt.s32.totalorder %s3274_s6, %s3274_s6 }
  0xc3   : > { %p2746_p4 = scmp.lt.s32.totalorder %s2744_s25, %s2737_s12 }
  0xc4   : > { %p2740_p12 = pnand %p2738_p7, %p3905_p11 }
  0xc5   : > { %p2747_p1 = por %p2746_p4, %p2745_p6 }
  0xc6   : > { %p2741_p0 = pneg %p2740_p12 }
  0xc8   : > { %p2748_p9 = pnand %p2747_p1, %p2741_p0 }
  0xca   : > { %2751 = shalt.err (!%p2748_p9)
}
  0xcb   : > { %2403 = dma.hbm_to_vmem [thread:$0]  (!%p3906_p13), %s3837_s5, 16, %s3274_s6, [#allocation15]  }
  0xcc   : > { %s1934_s0 = sshll.u32 %s3183_s15, 8  ;;  %s1980_s3 = sshll.u32 %s2966_s26, 12 }
  0xcd   : > { %s3326_s22 = scalar_lea.hbm %s3840_s8, %s1980_s3  ;;  %s452_s20 = scalar_lea.vmem [#allocation18], %s1934_s0 }
  0xce   : > { %s459_s21 = sshll.u32 %s452_s20, 4  ;;  %s2984_s23 = smov [#allocation20]   ;;  %s3328_s21 = int_to_ptr.vmem [resolvable:$true] %s459_s21 }
  0xcf   : > { %s3330_s18 = sshll.u32 %s2984_s23, 4  ;;  %s2752_s12 = scalar_lea.hbm %s3326_s22, 4096  ;;  %s384_s18 = int_to_ptr.vmem [resolvable:$true] %s3330_s18 }
  0xd0   : > { %p2753_p2 = scmp.ne.s32.totalorder %s3326_s22, %s2752_s12  ;;  %s2757_s24 = scalar_lea.hbm %s3840_s8, 12288 }
  0xd1   : > { %p2758_p8 = scmp.lt.u32.totalorder %s3326_s22, %s3840_s8  ;;  %p2759_p7 = scmp.lt.u32.totalorder %s2757_s24, %s2752_s12 }
  0xd2   : > { %p2755_p3 = pnand %p2753_p2, %p3204_p10  ;;  %p2761_p0 = scmp.lt.u32.totalorder %s2752_s12, %s3326_s22 }
  0xd3   : > { %p2760_p12 = por %p2759_p7, %p2758_p8 }
  0xd4   : > { %p2756_p5 = pneg %p2755_p3 }
  0xd5   : > { %p2762_p6 = por %p2761_p0, %p2760_p12 }
  0xd7   : > { %p2763_p4 = pnand %p2762_p6, %p2756_p5 }
  0xd9   : > { %2766 = shalt.err (!%p2763_p4)
}
  0xda   : > { %s2767_s0 = scalar_lea.vmem %s3328_s21, 4096  ;;  %s2985_s16 = smov [#allocation18]  }
  0xdb   : > { %p2768_p1 = scmp.ne.s32.totalorder %s3328_s21, %s2767_s0  ;;  %s2772_s29 = sshll.u32 %s2985_s16, 4  ;;  %s2773_s29 = int_to_ptr.vmem [resolvable:$false] %s2772_s29 }
  0xdc   : > { %s2774_s20 = scalar_lea.vmem %s2773_s29, 8192  ;;  %p2775_p3 = scmp.lt.s32.totalorder %s3328_s21, %s2773_s29 }
  0xdd   : > { %p2770_p9 = pnand %p2768_p1, %p3204_p10  ;;  %p2776_p13 = scmp.lt.s32.totalorder %s2774_s20, %s2767_s0 }
  0xdf   : > { %p2771_p2 = pneg %p2770_p9  ;;  %p2777_p8 = por %p2776_p13, %p2775_p3 }
  0xe1   : > { %p2778_p7 = pnand %p2777_p8, %p2771_p2 }
  0xe3   : > { %2781 = shalt.err (!%p2778_p7)
}
  0xe4   : > { %p3907_p5 = scmp.ne.s32.totalorder %s3895_s14, 0  ;;  %s3908_s23 = smov 16  }
  0xe5   : > { %s3909_s12 = smov 256   ;;  %s2782_s24 = scalar_lea.hbm %s3842_s10, 4096 }
  0xe6   : > { %2419 = dma.hbm_to_vmem [thread:$0]  (!%p3907_p5), %s3326_s22, 4096, %s3328_s21, %s3198_s30, %s3909_s12, %s3909_s12, %s3908_s23  }
  0xe7   : > { %p2783_p13 = scmp.ne.s32.totalorder %s3842_s10, %s2782_s24  ;;  %p2789_p6 = scmp.lt.u32.totalorder %s2782_s24, %s3842_s10 }
  0xe9   : > { %p2785_p12 = pnand %p2783_p13, %p3905_p11 }
  0xeb   : > { %p2786_p0 = pneg %p2785_p12 }
  0xed   : > { %p2791_p4 = pnand %p2789_p6, %p2786_p0 }
  0xef   : > { %2794 = shalt.err (!%p2791_p4)
}
  0xf0   : > { %s2795_s29 = scalar_lea.vmem %s384_s18, 4096  ;;  %p2803_p3 = scmp.lt.s32.totalorder %s384_s18, %s384_s18 }
  0xf1   : > { %p2796_p1 = scmp.ne.s32.totalorder %s384_s18, %s2795_s29  ;;  %p2804_p8 = scmp.lt.s32.totalorder %s2795_s29, %s2795_s29 }
  0xf3   : > { %p2798_p9 = pnand %p2796_p1, %p3905_p11  ;;  %p2805_p7 = por %p2804_p8, %p2803_p3 }
  0xf5   : > { %p2799_p2 = pneg %p2798_p9 }
  0xf7   : > { %p2806_p5 = pnand %p2805_p7, %p2799_p2 }
  0xf9   : > { %2809 = shalt.err (!%p2806_p5)
}
  0xfa   : > { %p3910_p13 = scmp.ne.s32.totalorder %s3887_s13, 0  ;;  %s2986_s20 = smov [#allocation21]  }
  0xfb   : > { %s397_s6 = sshll.u32 %s2986_s20, 4  ;;  %s3384_s2 = scalar_lea.hbm %s3841_s9, %s1979_s17  ;;  %s398_s6 = int_to_ptr.vmem [resolvable:$true] %s397_s6 }
  0xfc   : > { %2406 = dma.hbm_to_vmem [thread:$0]  (!%p3910_p13), %s3842_s10, 4096, %s384_s18, [#allocation12], %s3909_s12, %s3909_s12, %s3908_s23  }
  0xfd   : > { %s2810_s16 = scalar_lea.hbm %s3843_s11, 32 }
  0xfe   : > { %p2811_p5 = scmp.ne.s32.totalorder %s3843_s11, %s2810_s16  ;;  %p2817_p6 = scmp.lt.u32.totalorder %s2810_s16, %s3843_s11 }
 0x100   : > { %p2813_p12 = pnand %p2811_p5, %p3905_p11 }
 0x102   : > { %p2814_p0 = pneg %p2813_p12 }
 0x104   : > { %p2819_p4 = pnand %p2817_p6, %p2814_p0 }
 0x106   : > { %2822 = shalt.err (!%p2819_p4)
}
 0x107   : > { %s2823_s12 = scalar_lea.vmem %s398_s6, 32  ;;  %p2831_p3 = scmp.lt.s32.totalorder %s398_s6, %s398_s6 }
 0x108   : > { %p2824_p1 = scmp.ne.s32.totalorder %s398_s6, %s2823_s12  ;;  %p2832_p8 = scmp.lt.s32.totalorder %s2823_s12, %s2823_s12 }
 0x10a   : > { %p2826_p9 = pnand %p2824_p1, %p3905_p11  ;;  %p2833_p7 = por %p2832_p8, %p2831_p3 }
 0x10c   : > { %p2827_p2 = pneg %p2826_p9 }
 0x10e   : > { %p2834_p10 = pnand %p2833_p7, %p2827_p2 }
 0x110   : > { %2837 = shalt.err (!%p2834_p10)
}
 0x111   : > { %2409 = dma.hbm_to_vmem [thread:$0]  (!%p3910_p13), %s3843_s11, 32, %s398_s6, [#allocation15]  }
 0x112   : > { %s3911_s19 = sshll.u32 %s3183_s15, 1  ;;  %s2838_s20 = scalar_lea.hbm %s3384_s2, 32 }
 0x113   : > { %s473_s22 = scalar_lea.vmem [#allocation19], %s3911_s19  ;;  %p2839_p11 = scmp.ne.s32.totalorder %s3384_s2, %s2838_s20 }
 0x114   : > { %s481_s21 = sshll.u32 %s473_s22, 4  ;;  %p3912_p5 = scmp.ne.s32.totalorder %s3897_s27, 0  ;;  %s482_s21 = int_to_ptr.vmem [resolvable:$true] %s481_s21 }
 0x115   : > { %s2843_s24 = scalar_lea.hbm %s3841_s9, 96  ;;  %p2844_p0 = scmp.lt.u32.totalorder %s3384_s2, %s3841_s9 }
 0x116   : > { %p2841_p10 = pnand %p2839_p11, %p3912_p5  ;;  %p2845_p6 = scmp.lt.u32.totalorder %s2843_s24, %s2838_s20 }
 0x117   : > { %p2847_p13 = scmp.lt.u32.totalorder %s2838_s20, %s3384_s2 }
 0x118   : > { %p2842_p12 = pneg %p2841_p10  ;;  %p2846_p4 = por %p2845_p6, %p2844_p0 }
 0x11a   : > { %p2848_p1 = por %p2847_p13, %p2846_p4 }
 0x11c   : > { %p2849_p9 = pnand %p2848_p1, %p2842_p12 }
 0x11e   : > { %2852 = shalt.err (!%p2849_p9)
}
 0x11f   : > { %s2853_s15 = scalar_lea.vmem %s482_s21, 32  ;;  %s2987_s6 = smov [#allocation19]  }
 0x120   : > { %p2854_p2 = scmp.ne.s32.totalorder %s482_s21, %s2853_s15  ;;  %s2858_s16 = sshll.u32 %s2987_s6, 4  ;;  %s2859_s16 = int_to_ptr.vmem [resolvable:$false] %s2858_s16 }
 0x121   : > { %s2860_s29 = scalar_lea.vmem %s2859_s16, 64  ;;  %p2861_p7 = scmp.lt.s32.totalorder %s482_s21, %s2859_s16 }
 0x122   : > { %p2856_p3 = pnand %p2854_p2, %p3912_p5  ;;  %p2862_p11 = scmp.lt.s32.totalorder %s2860_s29, %s2853_s15 }
 0x124   : > { %p2857_p8 = pneg %p2856_p3  ;;  %p2863_p10 = por %p2862_p11, %p2861_p7 }
 0x126   : > { %p2864_p0 = pnand %p2863_p10, %p2857_p8 }
 0x128   : > { %2867 = shalt.err (!%p2864_p0)
}
 0x129   : > { %p3913_p6 = scmp.ne.s32.totalorder %s3895_s14, 0  ;;  %p3914_p12 = scmp.ne.s32.totalorder %s3886_s28, 0 }
 0x12a   : > { %p3915_p5 = scmp.eq.s32.totalorder (!%p3914_p12), %s3116_s1, 0 }
 0x12b   : > { %2422 = dma.hbm_to_vmem [thread:$0]  (!%p3913_p6), %s3384_s2, 32, %s482_s21, %s3198_s30  }
 0x12c   : > { %490 = sbr.rel (%p3914_p12) target bundleno = 1611 (0x64b), region = 60 }
 0x133   : > { %2921 = dma.done.wait (%p3915_p5), [#allocation9], 512   ;;  %p3916_p4 = pmov %p3915_p5 }
 0x135   : > { %2923 = vsyncadd (%p3916_p4), [#allocation9], 4294966784  ;;  %p3917_p13 = pmov %p3916_p4 }
 0x136   : > { %p3918_p1 = pmov %p3916_p4 }
 0x137   : > { %2925 = dma.done.wait (%p3917_p13), [#allocation12], 2560  }
 0x138   : > { %2927 = vsyncadd (%p3918_p1), [#allocation12], 4294964736  ;;  %p3919_p9 = pmov %p3918_p1 }
 0x139   : > { %p3920_p2 = pmov %p3918_p1 }
 0x13a   : > { %2929 = dma.done.wait (%p3919_p9), [#allocation15], 16  }
 0x13b   : > { %2931 = vsyncadd (%p3920_p2), [#allocation15], 4294967280  ;;  %s3921_s27 = sld [smem:[#allocation31_spill]]  ;;  %s3922_s28 = sld [smem:[#allocation36_spill]] }
 0x13c   : > { %s508_s14 = sand.u32 1, %s3116_s1  }
 0x13d   : > { %s509_s18 = scalar_lea.sflag [#allocation9], %s508_s14 }
 0x141   : > { %s510_s30 = sand.u32 1, %s3921_s27   ;;  %p3923_p3 = scmp.ne.s32.totalorder %s3922_s28, 0 }
 0x142   : > { %s2354_s2 = smul.u32 1280, %s510_s30 }
 0x144   : > { %s3440_s23 = scalar_lea.vmem [#allocation16], %s2354_s2 }
 0x145   : > { %2933 = dma.done.wait (%p3923_p3), %s509_s18, 24640  }
 0x146   : > { %2935 = vsyncadd (%p3923_p3), %s509_s18, 4294942656  ;;  %s1945_s12 = sshll.u32 %s510_s30, 1  ;;  %s1946_s4 = sshll.u32 %s510_s30, 8 }
 0x147   : > { %s3446_s17 = scalar_lea.vmem [#allocation17], %s1945_s12  ;;  %s3448_s19 = scalar_lea.vmem [#allocation18], %s1946_s4 }
 0x148   : > { %s3450_s22 = scalar_lea.vmem [#allocation19], %s1945_s12  ;;  %p3924_p8 = pmov %p3918_p1 }
 0x149   : > { %p3925_p7 = pmov %p3918_p1 }
 0x14a   : > { %2937 = dma.done.wait (%p3924_p8), [#allocation12], 4096  }
 0x14b   : > { %2939 = vsyncadd (%p3925_p7), [#allocation12], 4294963200  ;;  %p3926_p11 = pmov %p3918_p1 }
 0x14c   : > { %p3927_p10 = pmov %p3918_p1 }
 0x14d   : > { %2941 = dma.done.wait (%p3926_p11), [#allocation15], 32  }
 0x14e   : > { %2943 = vsyncadd (%p3927_p10), [#allocation15], 4294967264  ;;  %v597_v0 = vlaneseq  ;;  %s601_s21 = sld [smem:[#allocation6]]  ;;  %s1952_s20 = sld [smem:[#allocation6 + $0x1]]  ;;  %v2988_v5 = vmov 0.0  }
 0x14f   : > { %s3928_s13 = sld [smem:[#allocation33_spill]] }
 0x150   : > { %v3460_v1 = vshrl.u32 %v597_v0, 7 }
 0x152   : > { %v599_v2 = vadd.s32 8, %v3460_v1 }
 0x154   : > { %v602_v3 = vstv %s601_s21  ;;  %v611_v4 = vstv %s1952_s20 }
 0x155   : > { %vm603_vm0 = vcmp.lt.s32.totalorder %v3460_v1, %v602_v3  ;;  %vm604_vm1 = vcmp.lt.s32.totalorder %v599_v2, %v602_v3  ;;  %vm612_vm2 = vcmp.lt.s32.totalorder %v3460_v1, %v611_v4  ;;  %vm613_vm3 = vcmp.lt.s32.totalorder %v599_v2, %v611_v4  ;;  %p1955_p0 = scmp.ne.s32.totalorder %s3928_s13, 0 }
 0x156   : > { %v3466_v6 = vsel %vm603_vm0, 1.0, %v2988_v5  ;;  %v3469_v7 = vsel %vm604_vm1, 1.0, %v2988_v5  ;;  %v3472_v8 = vsel %vm612_vm2, 1.0, %v2988_v5  ;;  %v3475_v9 = vsel %vm613_vm3, 1.0, %v2988_v5  ;;  %v626_v10 = vld [vmem:[#allocation13] sm:$0xff] (!%p1955_p0)  ;;  %v627_v11 = vld [vmem:[#allocation13 + $0x8] sm:$0xff] (!%p1955_p0) }
 0x157   : > { %621 = sbr.rel (%p1955_p0) target bundleno = 596 (0x254), region = 104  ;;  %v628_v12 = vld [vmem:[#allocation13 + $0x10] sm:$0xff] (!%p1955_p0)  ;;  %v2507_v13 = vpack.i.bf16 (!%p1955_p0), %v3469_v7, %v3466_v6  ;;  %v2040_v14 = vpack.c.bf16 (!%p1955_p0), %v627_v11, %v626_v10  ;;  %v629_v15 = vld [vmem:[#allocation13 + $0x18] sm:$0xff] (!%p1955_p0)  ;;  %v2989_v16 = vmov (!%p1955_p0), 0   ;;  %v630_v18 = vld [vmem:[#allocation13 + $0x20] sm:$0xff] (!%p1955_p0)  ;;  %v2512_v20 = vpack.i.bf16 (!%p1955_p0), %v3475_v9, %v3472_v8 }
 0x158   : > { %2506 = vset.pattern.permute.xlu0 (!%p1955_p0), %v2989_v16  ;;  %v2044_v17 = vpack.c.bf16 (!%p1955_p0), %v629_v15, %v628_v12  ;;  %v631_v19 = vld [vmem:[#allocation13 + $0x28] sm:$0xff] (!%p1955_p0)  ;;  %v622_v22 = vld [vmem:[#allocation8] sm:$0xff] (!%p1955_p0)  ;;  %v624_v23 = vld [vmem:[#allocation8 + $0x10] sm:$0xff] (!%p1955_p0)  ;;  %v2990_v41 = vmov (!%p1955_p0), 0.0  }
 0x159   : > { %2508 = vperm.xlu0 (!%p1955_p0), %2506, %v2507_v13   ;;  %2041 = vmatprep.subr.bf16.mxu0 (!%p1955_p0), %v2040_v14  ;;  %v2048_v21 = vpack.c.bf16 (!%p1955_p0), %v631_v19, %v630_v18  ;;  %v632_v24 = vld [vmem:[#allocation13 + $0x30] sm:$0xff] (!%p1955_p0)  ;;  %v633_v25 = vld [vmem:[#allocation13 + $0x38] sm:$0xff] (!%p1955_p0)  ;;  %v634_v27 = vld [vmem:[#allocation13 + $0x40] sm:$0xff] (!%p1955_p0)  ;;  %758 = vst [vmem:[#allocation2] sm:$0xff] (!%p1955_p0), %v2990_v41 }
 0x15a   : > { %2296 = vmatprep.subr.bf16.mxu1 (!%p1955_p0), %v2040_v14  ;;  %2043 = vmatpush3.bf16.msra.mxu0 (!%p1955_p0), %v2040_v14  ;;  %v2052_v26 = vpack.c.bf16 (!%p1955_p0), %v633_v25, %v632_v24  ;;  %v635_v28 = vld [vmem:[#allocation13 + $0x48] sm:$0xff] (!%p1955_p0)  ;;  %v636_v30 = vld [vmem:[#allocation13 + $0x50] sm:$0xff] (!%p1955_p0)  ;;  %v637_v31 = vld [vmem:[#allocation13 + $0x58] sm:$0xff] (!%p1955_p0)  ;;  %759 = vst [vmem:[#allocation2 + $0x18] sm:$0xff] (!%p1955_p0), %v2990_v41 }
 0x15b   : > { %2304 = vmatpush3.bf16.msra.mxu1 (!%p1955_p0), %v2040_v14  ;;  %2045 = vmatprep.subr.bf16.mxu0 (!%p1955_p0), %v2044_v17  ;;  %v2056_v29 = vpack.c.bf16 (!%p1955_p0), %v635_v28, %v634_v27  ;;  %v2060_v32 = vpack.c.bf16 (!%p1955_p0), %v637_v31, %v636_v30  ;;  %v638_v33 = vld [vmem:[#allocation13 + $0x60] sm:$0xff] (!%p1955_p0)  ;;  %v639_v34 = vld [vmem:[#allocation13 + $0x68] sm:$0xff] (!%p1955_p0)  ;;  %v640_v36 = vld [vmem:[#allocation13 + $0x70] sm:$0xff] (!%p1955_p0)  ;;  %762 = vst [vmem:[#allocation2 + $0x20] sm:$0xff] (!%p1955_p0), %v2990_v41 }
 0x15c   : > { %2297 = vmatprep.subr.bf16.mxu1 (!%p1955_p0), %v2044_v17  ;;  %2034 = vmatprep.mubr.f32.mxu0 (!%p1955_p0), %v622_v22  ;;  %v2064_v35 = vpack.c.bf16 (!%p1955_p0), %v639_v34, %v638_v33  ;;  %v641_v37 = vld [vmem:[#allocation13 + $0x78] sm:$0xff] (!%p1955_p0)  ;;  %v623_v39 = vld [vmem:[#allocation8 + $0x8] sm:$0xff] (!%p1955_p0)  ;;  %763 = vst [vmem:[#allocation2 + $0x38] sm:$0xff] (!%p1955_p0), %v2990_v41  ;;  %v1956_v44 = vld [vmem:[#allocation14] ss:$0 sm:$0xff] (!%p1955_p0) }
 0x15d   : > { %2037 = vmatprep.mubr.f32.mxu1 (!%p1955_p0), %v624_v23  ;;  %2513 = vperm.xlu0 (!%p1955_p0), %2506, %v2512_v20   ;;  %v2068_v38 = vpack.c.bf16 (!%p1955_p0), %v641_v37, %v640_v36  ;;  %v625_v40 = vld [vmem:[#allocation8 + $0x18] sm:$0xff] (!%p1955_p0) }
 0x15e   : > { %2047 = vmatpush3.bf16.msra.mxu0 %v2044_v17 }
 0x15f   : > { %2305 = vmatpush3.bf16.msra.mxu1 %v2044_v17  ;;  %2049 = vmatprep.subr.bf16.mxu0 %v2048_v21 }
 0x160   : > { %2298 = vmatprep.subr.bf16.mxu1 %v2048_v21 }
 0x162   : > { %2051 = vmatpush3.bf16.msra.mxu0 %v2048_v21 }
 0x163   : > { %2306 = vmatpush3.bf16.msra.mxu1 %v2048_v21  ;;  %2053 = vmatprep.subr.bf16.mxu0 %v2052_v26 }
 0x164   : > { %2299 = vmatprep.subr.bf16.mxu1 %v2052_v26 }
 0x166   : > { %2055 = vmatpush3.bf16.msra.mxu0 %v2052_v26 }
 0x167   : > { %2307 = vmatpush3.bf16.msra.mxu1 %v2052_v26  ;;  %2057 = vmatprep.subr.bf16.mxu0 %v2056_v29 }
 0x168   : > { %2300 = vmatprep.subr.bf16.mxu1 %v2056_v29 }
 0x16a   : > { %2059 = vmatpush3.bf16.msra.mxu0 %v2056_v29 }
 0x16b   : > { %2308 = vmatpush3.bf16.msra.mxu1 %v2056_v29  ;;  %2061 = vmatprep.subr.bf16.mxu0 %v2060_v32 }
 0x16c   : > { %2301 = vmatprep.subr.bf16.mxu1 %v2060_v32 }
 0x16e   : > { %2063 = vmatpush3.bf16.msra.mxu0 %v2060_v32 }
 0x16f   : > { %2309 = vmatpush3.bf16.msra.mxu1 %v2060_v32  ;;  %2065 = vmatprep.subr.bf16.mxu0 %v2064_v35 }
 0x170   : > { %2302 = vmatprep.subr.bf16.mxu1 %v2064_v35 }
 0x172   : > { %2067 = vmatpush3.bf16.msra.mxu0 %v2064_v35 }
 0x173   : > { %2310 = vmatpush3.bf16.msra.mxu1 %v2064_v35  ;;  %2069 = vmatprep.subr.bf16.mxu0 %v2068_v38 }
 0x174   : > { %2303 = vmatprep.subr.bf16.mxu1 %v2068_v38 }
 0x176   : > { %2071 = vmatpush3.bf16.msra.mxu0 %v2068_v38 }
 0x177   : > { %2311 = vmatpush3.bf16.msra.mxu1 %v2068_v38 }
 0x179   : > { %2035 = vmatmul.mubr.f32.vlgmr.msra.gmra.mrb[0].mxu0 %v623_v39 }
 0x17a   : > { %2038 = vmatmul.mubr.f32.vlgmr.msra.gmra.mrb[0].mxu1 %v625_v40 }
 0x1d8   : > { %v2509_v42 = vpop.permute.xlu0 %2508 }
 0x1d9   : > { %v2511_v47 = vunpack.i.h.bf16 %v2509_v42  ;;  %v2510_v53 = vunpack.i.l.bf16 %v2509_v42 }
 0x1dc   : > { %v2514_v43 = vpop.permute.xlu0 %2513 }
 0x1dd   : > { %v2516_v48 = vunpack.i.h.bf16 %v2514_v43  ;;  %v2515_v54 = vunpack.i.l.bf16 %v2514_v43 }
 0x24c   : > { %v2036_v45 = vpop.f32.mrb[0].mxu0 }
 0x24d   : > { %v2039_v46 = vpop.f32.mrb[0].mxu1  ;;  %v721_v49 = vadd.f32 %v2036_v45, %v1956_v44  ;;  %v715_v51 = vpop.f32.mrb[1].mxu0 }
 0x24e   : > { %v731_v50 = vadd.f32 %v2039_v46, %v1956_v44  ;;  %v725_v52 = vpop.f32.mrb[1].mxu1  ;;  %v716_v55 = vadd.f32 %v1956_v44, %v715_v51 }
 0x24f   : > { %v726_v56 = vadd.f32 %v1956_v44, %v725_v52  ;;  %v755_v57 = vmul.f32 %v2511_v47, %v721_v49 }
 0x250   : > { %v757_v58 = vmul.f32 %v2516_v48, %v731_v50  ;;  %v754_v59 = vmul.f32 %v2510_v53, %v716_v55 }
 0x251   : > { %v756_v60 = vmul.f32 %v2515_v54, %v726_v56  ;;  %761 = vst [vmem:[#allocation2 + $0x10] sm:$0xff] %v755_v57 }
 0x252   : > { %765 = vst [vmem:[#allocation2 + $0x30] sm:$0xff] %v757_v58  ;;  %760 = vst [vmem:[#allocation2 + $0x8] sm:$0xff] %v754_v59 }
 0x253   : > { %764 = vst [vmem:[#allocation2 + $0x28] sm:$0xff] %v756_v60 }
 0x254 PF: > { %v921_v61 = vld [vmem:[%s3440_s23 + $0x208] sm:$0xff]  ;;  %v923_v62 = vld [vmem:[%s3440_s23 + $0x218] sm:$0xff]  ;;  %v920_v63 = vld [vmem:[%s3440_s23 + $0x200] sm:$0xff]  ;;  %s3929_s25 = sld [smem:[#allocation33_spill]] }
 0x255   : > { %v2136_v0 = vpack.c.bf16 %v923_v62, %v921_v61  ;;  %v922_v2 = vld [vmem:[%s3440_s23 + $0x210] sm:$0xff]  ;;  %v925_v3 = vld [vmem:[%s3440_s23 + $0x228] sm:$0xff]  ;;  %v927_v4 = vld [vmem:[%s3440_s23 + $0x238] sm:$0xff] }
 0x256   : > { %v2138_v10 = vpack.c.bf16 %v922_v2, %v920_v63  ;;  %v2140_v11 = vpack.c.bf16 %v927_v4, %v925_v3  ;;  %v924_v12 = vld [vmem:[%s3440_s23 + $0x220] sm:$0xff]  ;;  %v926_v13 = vld [vmem:[%s3440_s23 + $0x230] sm:$0xff]  ;;  %v929_v14 = vld [vmem:[%s3440_s23 + $0x248] sm:$0xff] }
 0x257   : > { %2137 = vmatprep.subr.bf16.mxu0 %v2136_v0  ;;  %v931_v15 = vld [vmem:[%s3440_s23 + $0x258] sm:$0xff]  ;;  %v2142_v16 = vpack.c.bf16 %v926_v13, %v924_v12  ;;  %v928_v18 = vld [vmem:[%s3440_s23 + $0x240] sm:$0xff]  ;;  %v930_v19 = vld [vmem:[%s3440_s23 + $0x250] sm:$0xff] }
 0x258   : > { %2139 = vmatpush1.bf16.msra.mxu0 %v2138_v10  ;;  %v2144_v17 = vpack.c.bf16 %v931_v15, %v929_v14  ;;  %v933_v20 = vld [vmem:[%s3440_s23 + $0x268] sm:$0xff]  ;;  %v935_v21 = vld [vmem:[%s3440_s23 + $0x278] sm:$0xff]  ;;  %v2146_v22 = vpack.c.bf16 %v930_v19, %v928_v18  ;;  %v932_v24 = vld [vmem:[%s3440_s23 + $0x260] sm:$0xff] }
 0x259   : > { %2141 = vmatprep.subr.bf16.mxu0 %v2140_v11  ;;  %v2148_v23 = vpack.c.bf16 %v935_v21, %v933_v20  ;;  %v934_v25 = vld [vmem:[%s3440_s23 + $0x270] sm:$0xff]  ;;  %v937_v26 = vld [vmem:[%s3440_s23 + $0x288] sm:$0xff]  ;;  %v939_v27 = vld [vmem:[%s3440_s23 + $0x298] sm:$0xff] }
 0x25a   : > { %v857_v28 = vld [vmem:[%s3440_s23 + $0x8] sm:$0xff]  ;;  %v859_v29 = vld [vmem:[%s3440_s23 + $0x18] sm:$0xff]  ;;  %v856_v31 = vld [vmem:[%s3440_s23] sm:$0xff]  ;;  %v2150_v33 = vpack.c.bf16 %v934_v25, %v932_v24  ;;  %v2152_v37 = vpack.c.bf16 %v939_v27, %v937_v26  ;;  %s3517_s24 = smul.u32 5, %s3929_s25 }
 0x25b   : > { %v2072_v30 = vpack.c.bf16 %v859_v29, %v857_v28  ;;  %v858_v32 = vld [vmem:[%s3440_s23 + $0x10] sm:$0xff]  ;;  %v936_v34 = vld [vmem:[%s3440_s23 + $0x280] sm:$0xff]  ;;  %v861_v36 = vld [vmem:[%s3440_s23 + $0x28] sm:$0xff] }
 0x25c   : > { %2143 = vmatpush1.bf16.msra.mxu0 %v2142_v16  ;;  %v2074_v35 = vpack.c.bf16 %v858_v32, %v856_v31  ;;  %v938_v38 = vld [vmem:[%s3440_s23 + $0x290] sm:$0xff]  ;;  %v941_v39 = vld [vmem:[%s3440_s23 + $0x2a8] sm:$0xff]  ;;  %v863_v40 = vld [vmem:[%s3440_s23 + $0x38] sm:$0xff]  ;;  %s787_s3 = sadd.s32 3, %s3517_s24  ;;  %s773_s6 = sadd.s32 1, %s3517_s24 }
 0x25d   : > { %2145 = vmatprep.subr.bf16.mxu0 %v2144_v17  ;;  %2073 = vmatprep.subr.bf16.mxu1 %v2072_v30  ;;  %v943_v41 = vld [vmem:[%s3440_s23 + $0x2b8] sm:$0xff]  ;;  %v2076_v42 = vpack.c.bf16 %v863_v40, %v861_v36  ;;  %v860_v43 = vld [vmem:[%s3440_s23 + $0x20] sm:$0xff]  ;;  %v862_v44 = vld [vmem:[%s3440_s23 + $0x30] sm:$0xff]  ;;  %v2154_v48 = vpack.c.bf16 %v938_v38, %v936_v34  ;;  %s3538_s0 = sld [smem:[#allocation7 + %s787_s3]]  ;;  %s780_s29 = sadd.s32 2, %s3517_s24 }
 0x25e   : > { %2075 = vmatpush1.bf16.msra.mxu1 %v2074_v35  ;;  %v2078_v45 = vpack.c.bf16 %v862_v44, %v860_v43  ;;  %v865_v46 = vld [vmem:[%s3440_s23 + $0x48] sm:$0xff]  ;;  %v867_v47 = vld [vmem:[%s3440_s23 + $0x58] sm:$0xff]  ;;  %v940_v49 = vld [vmem:[%s3440_s23 + $0x2a0] sm:$0xff]  ;;  %v2156_v52 = vpack.c.bf16 %v943_v41, %v941_v39  ;;  %s3588_s16 = sld [smem:[#allocation7 + %s773_s6]] }
 0x25f   : > { %2077 = vmatprep.subr.bf16.mxu1 %v2076_v42  ;;  %v2080_v50 = vpack.c.bf16 %v867_v47, %v865_v46  ;;  %v864_v51 = vld [vmem:[%s3440_s23 + $0x40] sm:$0xff]  ;;  %v942_v53 = vld [vmem:[%s3440_s23 + $0x2b0] sm:$0xff]  ;;  %v945_v54 = vld [vmem:[%s3440_s23 + $0x2c8] sm:$0xff]  ;;  %s3613_s27 = sld [smem:[#allocation7 + %s780_s29]] }
 0x260   : > { %2147 = vmatpush1.bf16.msra.mxu0 %v2146_v22  ;;  %v866_v55 = vld [vmem:[%s3440_s23 + $0x50] sm:$0xff]  ;;  %v947_v56 = vld [vmem:[%s3440_s23 + $0x2d8] sm:$0xff]  ;;  %v869_v58 = vld [vmem:[%s3440_s23 + $0x68] sm:$0xff]  ;;  %v2158_v63 = vpack.c.bf16 %v942_v53, %v940_v49  ;;  %s3630_s14 = sld [smem:[#allocation7 + %s787_s3]] }
 0x261   : > { %2149 = vmatprep.subr.bf16.mxu0 %v2148_v23  ;;  %v2082_v57 = vpack.c.bf16 %v866_v55, %v864_v51  ;;  %v871_v59 = vld [vmem:[%s3440_s23 + $0x78] sm:$0xff]  ;;  %v868_v61 = vld [vmem:[%s3440_s23 + $0x60] sm:$0xff]  ;;  %v870_v62 = vld [vmem:[%s3440_s23 + $0x70] sm:$0xff]  ;;  %v2160_v2 = vpack.c.bf16 %v947_v56, %v945_v54  ;;  %s3640_s30 = sld [smem:[#allocation7 + %s780_s29]] }
 0x262   : > { %2079 = vmatpush1.bf16.msra.mxu1 %v2078_v45  ;;  %v2084_v60 = vpack.c.bf16 %v871_v59, %v869_v58  ;;  %v873_v0 = vld [vmem:[%s3440_s23 + $0x88] sm:$0xff]  ;;  %v944_v3 = vld [vmem:[%s3440_s23 + $0x2c0] sm:$0xff]  ;;  %v946_v4 = vld [vmem:[%s3440_s23 + $0x2d0] sm:$0xff]  ;;  %v2086_v13 = vpack.c.bf16 %v870_v62, %v868_v61  ;;  %s3647_s2 = sld [smem:[#allocation7 + %s3517_s24]] }
 0x263   : > { %2081 = vmatprep.subr.bf16.mxu1 %v2080_v50  ;;  %v875_v10 = vld [vmem:[%s3440_s23 + $0x98] sm:$0xff]  ;;  %v949_v11 = vld [vmem:[%s3440_s23 + $0x2e8] sm:$0xff]  ;;  %v872_v15 = vld [vmem:[%s3440_s23 + $0x80] sm:$0xff]  ;;  %v2162_v17 = vpack.c.bf16 %v946_v4, %v944_v3  ;;  %s789_s15 = scalar_lea.vmem [#allocation2], %s3538_s0  ;;  %s3662_s12 = sld [smem:[#allocation7 + %s773_s6]] }
 0x264   : > { %2151 = vmatpush1.bf16.msra.mxu0 %v2150_v33  ;;  %v951_v12 = vld [vmem:[%s3440_s23 + $0x2f8] sm:$0xff]  ;;  %v2088_v14 = vpack.c.bf16 %v875_v10, %v873_v0  ;;  %v874_v16 = vld [vmem:[%s3440_s23 + $0x90] sm:$0xff]  ;;  %v877_v18 = vld [vmem:[%s3440_s23 + $0xa8] sm:$0xff]  ;;  %s775_s28 = scalar_lea.vmem [#allocation2], %s3588_s16  ;;  %s3670_s21 = sld [smem:[#allocation7 + %s3517_s24]] }
 0x265   : > { %2153 = vmatprep.subr.bf16.mxu0 %v2152_v37  ;;  %v879_v19 = vld [vmem:[%s3440_s23 + $0xb8] sm:$0xff]  ;;  %v2164_v20 = vpack.c.bf16 %v951_v12, %v949_v11  ;;  %v948_v21 = vld [vmem:[%s3440_s23 + $0x2e0] sm:$0xff]  ;;  %v950_v22 = vld [vmem:[%s3440_s23 + $0x2f0] sm:$0xff]  ;;  %v2090_v25 = vpack.c.bf16 %v874_v16, %v872_v15  ;;  %s782_s18 = scalar_lea.vmem [#allocation2], %s3613_s27  ;;  %s794_s0 = sadd.s32 4, %s3517_s24 }
 0x266   : > { %2083 = vmatpush1.bf16.msra.mxu1 %v2082_v57  ;;  %v953_v23 = vld [vmem:[%s3440_s23 + $0x308] sm:$0xff]  ;;  %v955_v24 = vld [vmem:[%s3440_s23 + $0x318] sm:$0xff]  ;;  %v2092_v26 = vpack.c.bf16 %v879_v19, %v877_v18  ;;  %v876_v27 = vld [vmem:[%s3440_s23 + $0xa0] sm:$0xff]  ;;  %v2166_v29 = vpack.c.bf16 %v950_v22, %v948_v21  ;;  %s1805_s4 = scalar_lea.vmem [#allocation2], %s3630_s14  ;;  %s795_s6 = sld [smem:[#allocation7 + %s794_s0]] }
 0x267   : > { %2085 = vmatprep.subr.bf16.mxu1 %v2084_v60  ;;  %v878_v28 = vld [vmem:[%s3440_s23 + $0xb0] sm:$0xff]  ;;  %v881_v30 = vld [vmem:[%s3440_s23 + $0xc8] sm:$0xff]  ;;  %v883_v31 = vld [vmem:[%s3440_s23 + $0xd8] sm:$0xff]  ;;  %v2168_v32 = vpack.c.bf16 %v955_v24, %v953_v23  ;;  %s1803_s20 = scalar_lea.vmem [#allocation2], %s3640_s30  ;;  %s829_s24 = sld [smem:[#allocation7 + %s794_s0]] }
 0x268   : > { %2155 = vmatpush1.bf16.msra.mxu0 %v2154_v48  ;;  %v952_v33 = vld [vmem:[%s3440_s23 + $0x300] sm:$0xff]  ;;  %v954_v34 = vld [vmem:[%s3440_s23 + $0x310] sm:$0xff]  ;;  %v957_v35 = vld [vmem:[%s3440_s23 + $0x328] sm:$0xff]  ;;  %v2094_v37 = vpack.c.bf16 %v878_v28, %v876_v27  ;;  %v2096_v38 = vpack.c.bf16 %v883_v31, %v881_v30  ;;  %s768_s13 = scalar_lea.vmem [#allocation2], %s3647_s2 }
 0x269   : > { %2157 = vmatprep.subr.bf16.mxu0 %v2156_v52  ;;  %v959_v36 = vld [vmem:[%s3440_s23 + $0x338] sm:$0xff]  ;;  %v880_v39 = vld [vmem:[%s3440_s23 + $0xc0] sm:$0xff]  ;;  %v882_v40 = vld [vmem:[%s3440_s23 + $0xd0] sm:$0xff]  ;;  %v2170_v41 = vpack.c.bf16 %v954_v34, %v952_v33  ;;  %s1801_s3 = scalar_lea.vmem [#allocation2], %s3662_s12 }
 0x26a   : > { %2087 = vmatpush1.bf16.msra.mxu1 %v2086_v13  ;;  %v885_v42 = vld [vmem:[%s3440_s23 + $0xe8] sm:$0xff]  ;;  %v887_v43 = vld [vmem:[%s3440_s23 + $0xf8] sm:$0xff]  ;;  %v2172_v44 = vpack.c.bf16 %v959_v36, %v957_v35  ;;  %v956_v45 = vld [vmem:[%s3440_s23 + $0x320] sm:$0xff]  ;;  %v2098_v50 = vpack.c.bf16 %v882_v40, %v880_v39 }
 0x26b   : > { %2089 = vmatprep.subr.bf16.mxu1 %v2088_v14  ;;  %v958_v46 = vld [vmem:[%s3440_s23 + $0x330] sm:$0xff]  ;;  %v790_v47 = vld [vmem:[%s789_s15] sm:$0xff]  ;;  %v961_v48 = vld [vmem:[%s3440_s23 + $0x348] sm:$0xff]  ;;  %v2100_v51 = vpack.c.bf16 %v887_v43, %v885_v42 }
 0x26c   : > { %2159 = vmatpush1.bf16.msra.mxu0 %v2158_v63  ;;  %v963_v49 = vld [vmem:[%s3440_s23 + $0x358] sm:$0xff]  ;;  %1181 = vmatprep.mubr.f32.mxu0 %v790_v47  ;;  %v884_v52 = vld [vmem:[%s3440_s23 + $0xe0] sm:$0xff]  ;;  %v886_v53 = vld [vmem:[%s3440_s23 + $0xf0] sm:$0xff]  ;;  %v2174_v54 = vpack.c.bf16 %v958_v46, %v956_v45  ;;  %s796_s16 = scalar_lea.vmem [#allocation2], %s795_s6 }
 0x26d   : > { %2161 = vmatprep.subr.bf16.mxu0 %v2160_v2  ;;  %v889_v55 = vld [vmem:[%s3440_s23 + $0x108] sm:$0xff]  ;;  %v891_v56 = vld [vmem:[%s3440_s23 + $0x118] sm:$0xff]  ;;  %v2176_v57 = vpack.c.bf16 %v963_v49, %v961_v48  ;;  %v960_v58 = vld [vmem:[%s3440_s23 + $0x340] sm:$0xff]  ;;  %v2102_v62 = vpack.c.bf16 %v886_v53, %v884_v52 }
 0x26e   : > { %2091 = vmatpush1.bf16.msra.mxu1 %v2090_v25  ;;  %v962_v59 = vld [vmem:[%s3440_s23 + $0x350] sm:$0xff]  ;;  %v965_v60 = vld [vmem:[%s3440_s23 + $0x368] sm:$0xff]  ;;  %v967_v61 = vld [vmem:[%s3440_s23 + $0x378] sm:$0xff]  ;;  %v2104_v63 = vpack.c.bf16 %v891_v56, %v889_v55 }
 0x26f   : > { %2093 = vmatprep.subr.bf16.mxu1 %v2092_v26  ;;  %v888_v0 = vld [vmem:[%s3440_s23 + $0x100] sm:$0xff]  ;;  %v890_v2 = vld [vmem:[%s3440_s23 + $0x110] sm:$0xff]  ;;  %v2178_v3 = vpack.c.bf16 %v962_v59, %v960_v58  ;;  %v893_v4 = vld [vmem:[%s3440_s23 + $0x128] sm:$0xff]  ;;  %v2180_v11 = vpack.c.bf16 %v967_v61, %v965_v60 }
 0x270   : > { %2163 = vmatpush1.bf16.msra.mxu0 %v2162_v17  ;;  %v895_v10 = vld [vmem:[%s3440_s23 + $0x138] sm:$0xff]  ;;  %v964_v12 = vld [vmem:[%s3440_s23 + $0x360] sm:$0xff]  ;;  %v966_v13 = vld [vmem:[%s3440_s23 + $0x370] sm:$0xff]  ;;  %v2106_v16 = vpack.c.bf16 %v890_v2, %v888_v0 }
 0x271   : > { %2165 = vmatprep.subr.bf16.mxu0 %v2164_v20  ;;  %v969_v14 = vld [vmem:[%s3440_s23 + $0x388] sm:$0xff]  ;;  %v971_v15 = vld [vmem:[%s3440_s23 + $0x398] sm:$0xff]  ;;  %v2108_v17 = vpack.c.bf16 %v895_v10, %v893_v4  ;;  %v892_v18 = vld [vmem:[%s3440_s23 + $0x120] sm:$0xff]  ;;  %v2182_v20 = vpack.c.bf16 %v966_v13, %v964_v12 }
 0x272   : > { %2095 = vmatpush1.bf16.msra.mxu1 %v2094_v37  ;;  %v894_v19 = vld [vmem:[%s3440_s23 + $0x130] sm:$0xff]  ;;  %v897_v21 = vld [vmem:[%s3440_s23 + $0x148] sm:$0xff]  ;;  %v899_v22 = vld [vmem:[%s3440_s23 + $0x158] sm:$0xff]  ;;  %v2184_v23 = vpack.c.bf16 %v971_v15, %v969_v14 }
 0x273   : > { %2097 = vmatprep.subr.bf16.mxu1 %v2096_v38  ;;  %v968_v24 = vld [vmem:[%s3440_s23 + $0x380] sm:$0xff]  ;;  %v970_v25 = vld [vmem:[%s3440_s23 + $0x390] sm:$0xff]  ;;  %v973_v26 = vld [vmem:[%s3440_s23 + $0x3a8] sm:$0xff]  ;;  %v2110_v28 = vpack.c.bf16 %v894_v19, %v892_v18 }
 0x274   : > { %2167 = vmatpush1.bf16.msra.mxu0 %v2166_v29  ;;  %v975_v27 = vld [vmem:[%s3440_s23 + $0x3b8] sm:$0xff]  ;;  %v2112_v29 = vpack.c.bf16 %v899_v22, %v897_v21  ;;  %v896_v30 = vld [vmem:[%s3440_s23 + $0x140] sm:$0xff]  ;;  %v898_v31 = vld [vmem:[%s3440_s23 + $0x150] sm:$0xff] }
 0x275   : > { %2169 = vmatprep.subr.bf16.mxu0 %v2168_v32  ;;  %v2186_v32 = vpack.c.bf16 %v970_v25, %v968_v24  ;;  %v901_v33 = vld [vmem:[%s3440_s23 + $0x168] sm:$0xff]  ;;  %v903_v34 = vld [vmem:[%s3440_s23 + $0x178] sm:$0xff]  ;;  %v2188_v35 = vpack.c.bf16 %v975_v27, %v973_v26  ;;  %v972_v36 = vld [vmem:[%s3440_s23 + $0x3a0] sm:$0xff]  ;;  %v2114_v40 = vpack.c.bf16 %v898_v31, %v896_v30 }
 0x276   : > { %2099 = vmatpush1.bf16.msra.mxu1 %v2098_v50  ;;  %v974_v37 = vld [vmem:[%s3440_s23 + $0x3b0] sm:$0xff]  ;;  %v977_v38 = vld [vmem:[%s3440_s23 + $0x3c8] sm:$0xff]  ;;  %v979_v39 = vld [vmem:[%s3440_s23 + $0x3d8] sm:$0xff] }
 0x277   : > { %2101 = vmatprep.subr.bf16.mxu1 %v2100_v51  ;;  %v900_v42 = vld [vmem:[%s3440_s23 + $0x160] sm:$0xff]  ;;  %v902_v43 = vld [vmem:[%s3440_s23 + $0x170] sm:$0xff]  ;;  %v905_v45 = vld [vmem:[%s3440_s23 + $0x188] sm:$0xff]  ;;  %v2192_v47 = vpack.c.bf16 %v979_v39, %v977_v38 }
 0x278   : > { %2171 = vmatpush1.bf16.msra.mxu0 %v2170_v41  ;;  %v2116_v41 = vpack.c.bf16 %v903_v34, %v901_v33  ;;  %v907_v46 = vld [vmem:[%s3440_s23 + $0x198] sm:$0xff]  ;;  %v976_v48 = vld [vmem:[%s3440_s23 + $0x3c0] sm:$0xff]  ;;  %v978_v49 = vld [vmem:[%s3440_s23 + $0x3d0] sm:$0xff]  ;;  %v2118_v52 = vpack.c.bf16 %v902_v43, %v900_v42 }
 0x279   : > { %2173 = vmatprep.subr.bf16.mxu0 %v2172_v44  ;;  %v2190_v44 = vpack.c.bf16 %v974_v37, %v972_v36  ;;  %v981_v50 = vld [vmem:[%s3440_s23 + $0x3e8] sm:$0xff]  ;;  %v983_v51 = vld [vmem:[%s3440_s23 + $0x3f8] sm:$0xff]  ;;  %v904_v55 = vld [vmem:[%s3440_s23 + $0x180] sm:$0xff] }
 0x27a   : > { %2103 = vmatpush1.bf16.msra.mxu1 %v2102_v62  ;;  %v776_v53 = vld [vmem:[%s775_s28] sm:$0xff]  ;;  %v906_v56 = vld [vmem:[%s3440_s23 + $0x190] sm:$0xff]  ;;  %v909_v58 = vld [vmem:[%s3440_s23 + $0x1a8] sm:$0xff]  ;;  %v2196_v60 = vpack.c.bf16 %v983_v51, %v981_v50 }
 0x27b   : > { %2105 = vmatprep.subr.bf16.mxu1 %v2104_v63  ;;  %1092 = vmatprep.mubr.f32.mxu1 %v776_v53  ;;  %v911_v59 = vld [vmem:[%s3440_s23 + $0x1b8] sm:$0xff]  ;;  %v980_v61 = vld [vmem:[%s3440_s23 + $0x3e0] sm:$0xff]  ;;  %v982_v62 = vld [vmem:[%s3440_s23 + $0x3f0] sm:$0xff]  ;;  %v2122_v2 = vpack.c.bf16 %v906_v56, %v904_v55 }
 0x27c   : > { %2175 = vmatpush1.bf16.msra.mxu0 %v2174_v54  ;;  %v2120_v54 = vpack.c.bf16 %v907_v46, %v905_v45  ;;  %v985_v63 = vld [vmem:[%s3440_s23 + $0x408] sm:$0xff]  ;;  %v987_v0 = vld [vmem:[%s3440_s23 + $0x418] sm:$0xff]  ;;  %v908_v4 = vld [vmem:[%s3440_s23 + $0x1a0] sm:$0xff] }
 0x27d   : > { %2177 = vmatprep.subr.bf16.mxu0 %v2176_v57  ;;  %v2194_v57 = vpack.c.bf16 %v978_v49, %v976_v48  ;;  %v910_v10 = vld [vmem:[%s3440_s23 + $0x1b0] sm:$0xff]  ;;  %v913_v12 = vld [vmem:[%s3440_s23 + $0x1c8] sm:$0xff]  ;;  %v915_v13 = vld [vmem:[%s3440_s23 + $0x1d8] sm:$0xff]  ;;  %v2200_v14 = vpack.c.bf16 %v987_v0, %v985_v63 }
 0x27e   : > { %2107 = vmatpush1.bf16.msra.mxu1 %v2106_v16  ;;  %v984_v15 = vld [vmem:[%s3440_s23 + $0x400] sm:$0xff]  ;;  %v986_v16 = vld [vmem:[%s3440_s23 + $0x410] sm:$0xff]  ;;  %v991_v18 = vld [vmem:[%s3440_s23 + $0x438] sm:$0xff]  ;;  %v2126_v19 = vpack.c.bf16 %v910_v10, %v908_v4 }
 0x27f   : > { %2109 = vmatprep.subr.bf16.mxu1 %v2108_v17  ;;  %v989_v17 = vld [vmem:[%s3440_s23 + $0x428] sm:$0xff]  ;;  %v912_v21 = vld [vmem:[%s3440_s23 + $0x1c0] sm:$0xff]  ;;  %v914_v22 = vld [vmem:[%s3440_s23 + $0x1d0] sm:$0xff]  ;;  %v2202_v24 = vpack.c.bf16 %v986_v16, %v984_v15 }
 0x280   : > { %2179 = vmatpush1.bf16.msra.mxu0 %v2178_v3  ;;  %v2124_v3 = vpack.c.bf16 %v911_v59, %v909_v58  ;;  %v917_v25 = vld [vmem:[%s3440_s23 + $0x1e8] sm:$0xff]  ;;  %v919_v26 = vld [vmem:[%s3440_s23 + $0x1f8] sm:$0xff]  ;;  %v2204_v27 = vpack.c.bf16 %v991_v18, %v989_v17  ;;  %v2130_v33 = vpack.c.bf16 %v914_v22, %v912_v21  ;;  %v918_v36 = vld [vmem:[%s3440_s23 + $0x1f0] sm:$0xff] }
 0x281   : > { %2181 = vmatprep.subr.bf16.mxu0 %v2180_v11  ;;  %v2198_v11 = vpack.c.bf16 %v982_v62, %v980_v61  ;;  %v791_v30 = vld [vmem:[%s789_s15 + $0x8] sm:$0xff]  ;;  %v2132_v34 = vpack.c.bf16 %v919_v26, %v917_v25  ;;  %v1963_v42 = vld [vmem:[%s1805_s4 + $0x20] sm:$0xff]  ;;  %v998_v50 = vld [vmem:[%s3440_s23 + $0x470] sm:$0xff]  ;;  %s1799_s15 = scalar_lea.vmem [#allocation2], %s3670_s21 }
 0x282   : > { %2111 = vmatpush1.bf16.msra.mxu1 %v2110_v28  ;;  %v988_v28 = vld [vmem:[%s3440_s23 + $0x420] sm:$0xff]  ;;  %v993_v31 = vld [vmem:[%s3440_s23 + $0x448] sm:$0xff]  ;;  %v1003_v53 = vld [vmem:[%s3440_s23 + $0x498] sm:$0xff] }
 0x283   : > { %2113 = vmatprep.subr.bf16.mxu1 %v2112_v29  ;;  %v990_v29 = vld [vmem:[%s3440_s23 + $0x430] sm:$0xff]  ;;  %v784_v38 = vld [vmem:[%s782_s18 + $0x8] sm:$0xff]  ;;  %v1007_v62 = vld [vmem:[%s3440_s23 + $0x4b8] sm:$0xff] }
 0x284   : > { %2183 = vmatpush1.bf16.msra.mxu0 %v2182_v20  ;;  %v2128_v20 = vpack.c.bf16 %v915_v13, %v913_v12  ;;  %v2206_v37 = vpack.c.bf16 %v990_v29, %v988_v28  ;;  %v997_v43 = vld [vmem:[%s3440_s23 + $0x468] sm:$0xff]  ;;  %v996_v49 = vld [vmem:[%s3440_s23 + $0x460] sm:$0xff]  ;;  %v1006_v10 = vld [vmem:[%s3440_s23 + $0x4b0] sm:$0xff] }
 0x285   : > { %2185 = vmatprep.subr.bf16.mxu0 %v2184_v23  ;;  %v783_v23 = vld [vmem:[%s782_s18] sm:$0xff]  ;;  %v1964_v51 = vld [vmem:[%s1805_s4 + $0x28] sm:$0xff]  ;;  %v2214_v56 = vpack.c.bf16 %v998_v50, %v996_v49  ;;  %v1010_v18 = vld [vmem:[%s3440_s23 + $0x4d0] sm:$0xff] }
 0x286   : > { %2115 = vmatpush1.bf16.msra.mxu1 %v2114_v40  ;;  %v992_v40 = vld [vmem:[%s3440_s23 + $0x440] sm:$0xff]  ;;  %v1005_v61 = vld [vmem:[%s3440_s23 + $0x4a8] sm:$0xff]  ;;  %v1011_v12 = vld [vmem:[%s3440_s23 + $0x4d8] sm:$0xff] }
 0x287   : > { %2117 = vmatprep.subr.bf16.mxu1 %v2116_v41  ;;  %v994_v41 = vld [vmem:[%s3440_s23 + $0x450] sm:$0xff]  ;;  %v777_v55 = vld [vmem:[%s775_s28 + $0x8] sm:$0xff]  ;;  %v1959_v0 = vld [vmem:[%s1801_s3 + $0x20] sm:$0xff] }
 0x288   : > { %2187 = vmatpush1.bf16.msra.mxu0 %v2186_v32  ;;  %v995_v32 = vld [vmem:[%s3440_s23 + $0x458] sm:$0xff]  ;;  %v2210_v46 = vpack.c.bf16 %v994_v41, %v992_v40  ;;  %v1000_v59 = vld [vmem:[%s3440_s23 + $0x480] sm:$0xff]  ;;  %v1014_v25 = vld [vmem:[%s3440_s23 + $0x4f0] sm:$0xff] }
 0x289   : > { %2189 = vmatprep.subr.bf16.mxu0 %v2188_v35  ;;  %v916_v35 = vld [vmem:[%s3440_s23 + $0x1e0] sm:$0xff]  ;;  %v2208_v39 = vpack.c.bf16 %v995_v32, %v993_v31  ;;  %v1328_v31 = vld [vmem:[%s3448_s19 + $0x8] sm:$0xff]  ;;  %v1333_v41 = vld [vmem:[%s3448_s19 + $0x30] sm:$0xff] }
 0x28a   : > { %2119 = vmatpush1.bf16.msra.mxu1 %v2118_v52  ;;  %v2134_v45 = vpack.c.bf16 %v918_v36, %v916_v35  ;;  %v1001_v52 = vld [vmem:[%s3440_s23 + $0x488] sm:$0xff]  ;;  %v1004_v4 = vld [vmem:[%s3440_s23 + $0x4a0] sm:$0xff]  ;;  %v1329_v35 = vld [vmem:[%s3448_s19 + $0x10] sm:$0xff] }
 0x28b   : > { %2121 = vmatprep.subr.bf16.mxu1 %v2120_v54  ;;  %v769_v54 = vld [vmem:[%s768_s13] sm:$0xff]  ;;  %v2216_v58 = vpack.c.bf16 %v1003_v53, %v1001_v52  ;;  %v770_v63 = vld [vmem:[%s768_s13 + $0x8] sm:$0xff]  ;;  %v2222_v15 = vpack.c.bf16 %v1006_v10, %v1004_v4  ;;  %v1341_v53 = vld [vmem:[%s3448_s19 + $0x70] sm:$0xff] }
 0x28c   : > { %2191 = vmatpush1.bf16.msra.mxu0 %v2190_v44  ;;  %v999_v44 = vld [vmem:[%s3440_s23 + $0x478] sm:$0xff]  ;;  %v1008_v17 = vld [vmem:[%s3440_s23 + $0x4c0] sm:$0xff]  ;;  %v1340_v49 = vld [vmem:[%s3448_s19 + $0x68] sm:$0xff] }
 0x28d   : > { %2193 = vmatprep.subr.bf16.mxu0 %v2192_v47  ;;  %v1961_v47 = vld [vmem:[%s1803_s20 + $0x20] sm:$0xff]  ;;  %v2212_v48 = vpack.c.bf16 %v999_v44, %v997_v43  ;;  %v1958_v21 = vld [vmem:[%s1799_s15 + $0x28] sm:$0xff]  ;;  %v2226_v22 = vpack.c.bf16 %v1010_v18, %v1008_v17 }
 0x28e   : > { %2123 = vmatpush1.bf16.msra.mxu1 %v2122_v2  ;;  %v1957_v13 = vld [vmem:[%s1799_s15 + $0x20] sm:$0xff]  ;;  %v798_v28 = vld [vmem:[%s796_s16 + $0x8] sm:$0xff] }
 0x28f   : > { %2125 = vmatprep.subr.bf16.mxu1 %v2124_v3  ;;  %v2220_v3 = vpack.c.bf16 %v1007_v62, %v1005_v61  ;;  %v1330_v32 = vld [vmem:[%s3448_s19 + $0x18] sm:$0xff]  ;;  %v1331_v40 = vld [vmem:[%s3448_s19 + $0x20] sm:$0xff]  ;;  %v1336_v43 = vld [vmem:[%s3448_s19 + $0x48] sm:$0xff] }
 0x290   : > { %2195 = vmatpush1.bf16.msra.mxu0 %v2194_v57  ;;  %v1962_v57 = vld [vmem:[%s1803_s20 + $0x28] sm:$0xff]  ;;  %v1338_v44 = vld [vmem:[%s3448_s19 + $0x58] sm:$0xff] }
 0x291   : > { %2197 = vmatprep.subr.bf16.mxu0 %v2196_v60  ;;  %v1002_v60 = vld [vmem:[%s3440_s23 + $0x490] sm:$0xff]  ;;  %v1342_v50 = vld [vmem:[%s3448_s19 + $0x78] sm:$0xff]  ;;  %v1339_v52 = vld [vmem:[%s3448_s19 + $0x60] sm:$0xff] }
 0x292   : > { %2127 = vmatpush1.bf16.msra.mxu1 %v2126_v19  ;;  %v2218_v2 = vpack.c.bf16 %v1002_v60, %v1000_v59  ;;  %v1013_v19 = vld [vmem:[%s3440_s23 + $0x4e8] sm:$0xff]  ;;  %v1345_v59 = vld [vmem:[%s3448_s19 + $0x90] sm:$0xff]  ;;  %v1350_v62 = vld [vmem:[%s3448_s19 + $0xb8] sm:$0xff] }
 0x293   : > { %2129 = vmatprep.subr.bf16.mxu1 %v2128_v20  ;;  %v1015_v20 = vld [vmem:[%s3440_s23 + $0x4f8] sm:$0xff]  ;;  %v1348_v61 = vld [vmem:[%s3448_s19 + $0xa8] sm:$0xff]  ;;  %v1355_v18 = vld [vmem:[%s3448_s19 + $0xe0] sm:$0xff] }
 0x294   : > { %2199 = vmatpush1.bf16.msra.mxu0 %v2198_v11  ;;  %v1009_v11 = vld [vmem:[%s3440_s23 + $0x4c8] sm:$0xff]  ;;  %v1354_v10 = vld [vmem:[%s3448_s19 + $0xd8] sm:$0xff] }
 0x295   : > { %2201 = vmatprep.subr.bf16.mxu0 %v2200_v14  ;;  %v1960_v14 = vld [vmem:[%s1801_s3 + $0x28] sm:$0xff]  ;;  %v2224_v16 = vpack.c.bf16 %v1011_v12, %v1009_v11 }
 0x296   : > { %2131 = vmatpush1.bf16.msra.mxu1 %v2130_v33  ;;  %v2232_v33 = vpack.c.bf16 %v1330_v32, %v1328_v31  ;;  %v1352_v4 = vld [vmem:[%s3448_s19 + $0xc8] sm:$0xff]  ;;  %v1351_v12 = vld [vmem:[%s3448_s19 + $0xc0] sm:$0xff] }
 0x297   : > { %1182 = vmatmul.mubr.f32.vlgmr.msra.gmra.mrb[0].mxu0 %v783_v23  ;;  %2133 = vmatprep.subr.bf16.mxu1 %v2132_v34  ;;  %v2228_v23 = vpack.c.bf16 %v1015_v20, %v1013_v19  ;;  %v1327_v34 = vld [vmem:[%s3448_s19] sm:$0xff]  ;;  %v2256_v11 = vpack.c.bf16 %v1354_v10, %v1352_v4  ;;  %v1357_v19 = vld [vmem:[%s3448_s19 + $0xf0] sm:$0xff] }
 0x298   : > { %2203 = vmatpush1.bf16.msra.mxu0 %v2202_v24  ;;  %1187 = vmatprep.mubr.f32.mxu0 %v791_v30  ;;  %v1012_v24 = vld [vmem:[%s3440_s23 + $0x4e0] sm:$0xff]  ;;  %s1807_s23 = scalar_lea.vmem [#allocation2], %s829_s24  ;;  %v2234_v36 = vpack.c.bf16 %v1329_v35, %v1327_v34  ;;  %v2262_v20 = vpack.c.bf16 %v1357_v19, %v1355_v18 }
 0x299   : > { %2205 = vmatprep.subr.bf16.mxu0 %v2204_v27  ;;  %v2230_v26 = vpack.c.bf16 %v1014_v25, %v1012_v24  ;;  %v797_v27 = vld [vmem:[%s796_s16] sm:$0xff]  ;;  %v1966_v30 = vld [vmem:[%s1807_s23 + $0x28] sm:$0xff] }
 0x29a   : > { %2135 = vmatpush1.bf16.msra.mxu1 %v2134_v45  ;;  %v1965_v29 = vld [vmem:[%s1807_s23 + $0x20] sm:$0xff]  ;;  %v2240_v45 = vpack.c.bf16 %v1338_v44, %v1336_v43 }
 0x29b   : > { %1188 = vmatmul.mubr.f32.gmra.mrb[2].mxu0 %v784_v38  ;;  %2233 = vmatprep.subr.bf16.mxu1 %v2232_v33  ;;  %v1334_v38 = vld [vmem:[%s3448_s19 + $0x38] sm:$0xff] }
 0x29c   : > { %2207 = vmatpush1.bf16.msra.mxu0 %v2206_v37  ;;  %1193 = vmatprep.mubr.f32.mxu0 %v1963_v42  ;;  %v1332_v37 = vld [vmem:[%s3448_s19 + $0x28] sm:$0xff]  ;;  %v2238_v42 = vpack.c.bf16 %v1333_v41, %v1331_v40 }
 0x29d   : > { %2209 = vmatprep.subr.bf16.mxu0 %v2208_v39  ;;  %1093 = vmatmul.mubr.f32.vlgmr.msra.gmra.mrb[0].mxu1 %v769_v54  ;;  %v2236_v39 = vpack.c.bf16 %v1334_v38, %v1332_v37  ;;  %v2246_v54 = vpack.c.bf16 %v1341_v53, %v1339_v52 }
 0x29e   : > { %1098 = vmatprep.mubr.f32.mxu1 %v777_v55  ;;  %2235 = vmatpush1.bf16.msra.mxu1 %v2234_v36  ;;  %v1344_v55 = vld [vmem:[%s3448_s19 + $0x88] sm:$0xff] }
 0x29f   : > { %1194 = vmatmul.mubr.f32.gmra.mrb[4].mxu0 %v1961_v47  ;;  %2237 = vmatprep.subr.bf16.mxu1 %v2236_v39  ;;  %v1337_v47 = vld [vmem:[%s3448_s19 + $0x50] sm:$0xff] }
 0x2a0   : > { %2211 = vmatpush1.bf16.msra.mxu0 %v2210_v46  ;;  %1199 = vmatprep.mubr.f32.mxu0 %v1964_v51  ;;  %v1335_v46 = vld [vmem:[%s3448_s19 + $0x40] sm:$0xff]  ;;  %v2244_v51 = vpack.c.bf16 %v1342_v50, %v1340_v49 }
 0x2a1   : > { %2213 = vmatprep.subr.bf16.mxu0 %v2212_v48  ;;  %1099 = vmatmul.mubr.f32.gmra.mrb[2].mxu1 %v770_v63  ;;  %v2242_v48 = vpack.c.bf16 %v1337_v47, %v1335_v46  ;;  %v2252_v63 = vpack.c.bf16 %v1350_v62, %v1348_v61 }
 0x2a2   : > { %1104 = vmatprep.mubr.f32.mxu1 %v1959_v0  ;;  %2239 = vmatpush1.bf16.msra.mxu1 %v2238_v42  ;;  %v1347_v0 = vld [vmem:[%s3448_s19 + $0xa0] sm:$0xff] }
 0x2a3   : > { %1200 = vmatmul.mubr.f32.gmra.mrb[6].mxu0 %v1962_v57  ;;  %2241 = vmatprep.subr.bf16.mxu1 %v2240_v45 }
 0x2a4   : > { %2215 = vmatpush1.bf16.msra.mxu0 %v2214_v56  ;;  %1270 = vmatprep.mubr.f32.mxu0 %v2988_v5  ;;  %v1346_v56 = vld [vmem:[%s3448_s19 + $0x98] sm:$0xff] }
 0x2a5   : > { %2217 = vmatprep.subr.bf16.mxu0 %v2216_v58  ;;  %1105 = vmatmul.mubr.f32.gmra.mrb[4].mxu1 %v1957_v13  ;;  %v2248_v57 = vpack.c.bf16 %v1346_v56, %v1344_v55  ;;  %v1343_v58 = vld [vmem:[%s3448_s19 + $0x80] sm:$0xff]  ;;  %v1353_v13 = vld [vmem:[%s3448_s19 + $0xd0] sm:$0xff] }
 0x2a6   : > { %1110 = vmatprep.mubr.f32.mxu1 %v1960_v14  ;;  %2243 = vmatpush1.bf16.msra.mxu1 %v2242_v48  ;;  %v2250_v60 = vpack.c.bf16 %v1345_v59, %v1343_v58  ;;  %v2258_v14 = vpack.c.bf16 %v1353_v13, %v1351_v12 }
 0x2a7   : > { %2245 = vmatprep.subr.bf16.mxu1 %v2244_v51 }
 0x2a8   : > { %2219 = vmatpush1.bf16.msra.mxu0 %v2218_v2  ;;  %v1349_v2 = vld [vmem:[%s3448_s19 + $0xb0] sm:$0xff] }
 0x2a9   : > { %2221 = vmatprep.subr.bf16.mxu0 %v2220_v3  ;;  %1111 = vmatmul.mubr.f32.gmra.mrb[6].mxu1 %v1958_v21  ;;  %v2254_v3 = vpack.c.bf16 %v1349_v2, %v1347_v0 }
 0x2aa   : > { %1435 = vmatprep.mubr.f32.mxu1 %v2988_v5  ;;  %2247 = vmatpush1.bf16.msra.mxu1 %v2246_v54 }
 0x2ab   : > { %2249 = vmatprep.subr.bf16.mxu1 %v2248_v57 }
 0x2ac   : > { %2223 = vmatpush1.bf16.msra.mxu0 %v2222_v15  ;;  %v1356_v15 = vld [vmem:[%s3448_s19 + $0xe8] sm:$0xff] }
 0x2ad   : > { %2225 = vmatprep.subr.bf16.mxu0 %v2224_v16  ;;  %v1358_v16 = vld [vmem:[%s3448_s19 + $0xf8] sm:$0xff] }
 0x2ae   : > { %2251 = vmatpush1.bf16.msra.mxu1 %v2250_v60  ;;  %v2260_v17 = vpack.c.bf16 %v1358_v16, %v1356_v15 }
 0x2af   : > { %2253 = vmatprep.subr.bf16.mxu1 %v2252_v63 }
 0x2b0   : > { %2227 = vmatpush1.bf16.msra.mxu0 %v2226_v22 }
 0x2b1   : > { %2229 = vmatprep.subr.bf16.mxu0 %v2228_v23 }
 0x2b2   : > { %2255 = vmatpush1.bf16.msra.mxu1 %v2254_v3 }
 0x2b3   : > { %2257 = vmatprep.subr.bf16.mxu1 %v2256_v11 }
 0x2b4   : > { %2231 = vmatpush1.bf16.msra.mxu0 %v2230_v26 }
 0x2b6   : > { %2259 = vmatpush1.bf16.msra.mxu1 %v2258_v14 }
 0x2b7   : > { %1271 = vmatmul.mubr.f32.vlgmr.msra.gmra.mrb[0].mxu0 %v797_v27  ;;  %2261 = vmatprep.subr.bf16.mxu1 %v2260_v17  ;;  %v3735_v27 = vsub.s32 0, %v3460_v1 }
 0x2b8   : > { %1276 = vmatprep.mubr.f32.mxu0 %v2988_v5 }
 0x2ba   : > { %2263 = vmatpush1.bf16.msra.mxu1 %v2262_v20 }
 0x2bb   : > { %1277 = vmatmul.mubr.f32.gmra.mrb[2].mxu0 %v798_v28  ;;  %v1016_v28 = vld [vmem:[%s3446_s17] sm:$0x3] }
 0x2bc   : > { %1282 = vmatprep.mubr.f32.mxu0 %v2988_v5  ;;  %v1021_v32 = vrot.slane %v1016_v28, %v3735_v27 }
 0x2bf   : > { %1283 = vmatmul.mubr.f32.gmra.mrb[4].mxu0 %v1965_v29  ;;  %v3739_v29 = vsub.s32 1, %v3460_v1 }
 0x2c0   : > { %1288 = vmatprep.mubr.f32.mxu0 %v2988_v5 }
 0x2c1   : > { %v1025_v33 = vrot.slane %v1016_v28, %v3739_v29 }
 0x2c3   : > { %1289 = vmatmul.mubr.f32.gmra.mrb[6].mxu0 %v1966_v30 }
 0x370   : > { %v1094_v21 = vpop.f32.mrb[0].mxu1 }
 0x371   : > { %v1096_v22 = vpop.f32.mrb[1].mxu1  ;;  %v1095_v34 = vadd.f32 %v1094_v21, %v1021_v32 }
 0x372   : > { %v1097_v35 = vadd.f32 %v1096_v22, %v1025_v33 }
 0x374   : > { %v1100_v23 = vpop.f32.mrb[2].mxu1 }
 0x375   : > { %v1102_v24 = vpop.f32.mrb[3].mxu1  ;;  %v1101_v38 = vadd.f32 %v1100_v23, %v1021_v32  ;;  %v1359_v23 = vld [vmem:[%s3450_s22] sm:$0x3] }
 0x376   : > { %v1103_v41 = vadd.f32 %v1102_v24, %v1025_v33  ;;  %v1364_v24 = vrot.slane %v1359_v23, %v3735_v27 }
 0x378   : > { %v1106_v25 = vpop.f32.mrb[4].mxu1 }
 0x379   : > { %v1108_v26 = vpop.f32.mrb[5].mxu1  ;;  %v1107_v45 = vadd.f32 %v1106_v25, %v1021_v32  ;;  %v1368_v25 = vrot.slane %v1359_v23, %v3739_v29 }
 0x37a   : > { %v1109_v47 = vadd.f32 %v1108_v26, %v1025_v33 }
 0x37c   : > { %v1112_v30 = vpop.f32.mrb[6].mxu1 }
 0x37d   : > { %v1114_v31 = vpop.f32.mrb[7].mxu1  ;;  %v1113_v51 = vadd.f32 %v1112_v30, %v1021_v32 }
 0x37e   : > { %v1115_v54 = vadd.f32 %v1114_v31, %v1025_v33 }
 0x38a   : > { %v1272_v36 = vpop.f32.mrb[0].mxu0 }
 0x38b   : > { %v2313_v37 = vadd.f32 %v1272_v36, %v1095_v34  ;;  %v1274_v39 = vpop.f32.mrb[1].mxu0 }
 0x38c   : > { %v2315_v40 = vadd.f32 %v1274_v39, %v1097_v35 }
 0x38e   : > { %v1967_v42 = vmul.f32 -1.442695, %v2315_v40  ;;  %v1278_v43 = vpop.f32.mrb[2].mxu0 }
 0x38f   : > { %v2317_v44 = vadd.f32 %v1278_v43, %v1101_v38  ;;  %v1280_v1 = vpop.f32.mrb[3].mxu0 }
 0x390   : > { %2517 = vpow2.f32 %v1967_v42  ;;  %v2319_v46 = vadd.f32 %v1280_v1, %v1103_v41 }
 0x392   : > { %v1968_v48 = vmul.f32 -1.442695, %v2319_v46  ;;  %v1284_v49 = vpop.f32.mrb[4].mxu0 }
 0x393   : > { %v2321_v50 = vadd.f32 %v1284_v49, %v1107_v45  ;;  %v1286_v52 = vpop.f32.mrb[5].mxu0 }
 0x394   : > { %2519 = vpow2.f32 %v1968_v48  ;;  %v2323_v53 = vadd.f32 %v1286_v52, %v1109_v47 }
 0x396   : > { %v1969_v55 = vmul.f32 -1.442695, %v2323_v53  ;;  %v1290_v56 = vpop.f32.mrb[6].mxu0 }
 0x397   : > { %v2325_v57 = vadd.f32 %v1290_v56, %v1113_v51  ;;  %v1292_v58 = vpop.f32.mrb[7].mxu0 }
 0x398   : > { %2521 = vpow2.f32 %v1969_v55  ;;  %v2327_v59 = vadd.f32 %v1292_v58, %v1115_v54 }
 0x399   : > { %2523 = vtanh.f32 %v2313_v37 }
 0x39a   : > { %v2518_v60 = vpop.eup %2517  ;;  %v1970_v61 = vmul.f32 -1.442695, %v2327_v59 }
 0x39b   : > { %v1311_v62 = vadd.f32 1.0, %v2518_v60 }
 0x39c   : > { %2525 = vpow2.f32 %v1970_v61 }
 0x39d   : > { %2527 = vrcp.f32 %v1311_v62 }
 0x39e   : > { %v2520_v63 = vpop.eup %2519  ;;  %2529 = vtanh.f32 %v2317_v44 }
 0x39f   : > { %v1312_v0 = vadd.f32 1.0, %v2520_v63 }
 0x3a1   : > { %2531 = vrcp.f32 %v1312_v0 }
 0x3a2   : > { %v2522_v2 = vpop.eup %2521  ;;  %2533 = vtanh.f32 %v2321_v50 }
 0x3a3   : > { %v1313_v3 = vadd.f32 1.0, %v2522_v2  ;;  %v2524_v4 = vpop.eup %2523 }
 0x3a5   : > { %2535 = vrcp.f32 %v1313_v3 }
 0x3a6   : > { %v2526_v10 = vpop.eup %2525  ;;  %2537 = vtanh.f32 %v2325_v57 }
 0x3a7   : > { %v2528_v11 = vpop.eup %2527  ;;  %v1314_v12 = vadd.f32 1.0, %v2526_v10 }
 0x3a8   : > { %v1323_v13 = vmul.f32 %v2528_v11, %v2524_v4  ;;  %v2530_v14 = vpop.eup %2529 }
 0x3a9   : > { %2539 = vrcp.f32 %v1314_v12 }
 0x3aa   : > { %1436 = vmatmul.mubr.f32.vlgmr.msra.gmra.mrb[8].mxu1 %v1323_v13 }
 0x3ab   : > { %v2532_v15 = vpop.eup %2531  ;;  %1441 = vmatprep.mubr.f32.mxu1 %v2988_v5 }
 0x3ac   : > { %v1324_v16 = vmul.f32 %v2532_v15, %v2530_v14  ;;  %v2534_v17 = vpop.eup %2533 }
 0x3ae   : > { %1442 = vmatmul.mubr.f32.gmra.mrb[10].mxu1 %v1324_v16 }
 0x3af   : > { %v2536_v18 = vpop.eup %2535  ;;  %1447 = vmatprep.mubr.f32.mxu1 %v2988_v5 }
 0x3b0   : > { %v1325_v19 = vmul.f32 %v2536_v18, %v2534_v17  ;;  %v2538_v20 = vpop.eup %2537 }
 0x3b2   : > { %1448 = vmatmul.mubr.f32.gmra.mrb[12].mxu1 %v1325_v19 }
 0x3b3   : > { %v2540_v21 = vpop.eup %2539  ;;  %1453 = vmatprep.mubr.f32.mxu1 %v2988_v5 }
 0x3b4   : > { %v1326_v22 = vmul.f32 %v2540_v21, %v2538_v20 }
 0x3b6   : > { %1454 = vmatmul.mubr.f32.gmra.mrb[14].mxu1 %v1326_v22 }
 0x47d   : > { %v1437_v26 = vpop.f32.mrb[8].mxu1 }
 0x47e   : > { %v1438_v28 = vadd.f32 %v1437_v26, %v1364_v24  ;;  %v1439_v30 = vpop.f32.mrb[9].mxu1 }
 0x47f   : > { %v1440_v31 = vadd.f32 %v1439_v30, %v1368_v25 }
 0x481   : > { %v1443_v32 = vpop.f32.mrb[10].mxu1  ;;  %1463 = vst [vmem:[#allocation3] sm:$0xff] (!%p1955_p0), %v1440_v31 }
 0x482   : > { %v1444_v33 = vadd.f32 %v1443_v32, %v1364_v24  ;;  %v1445_v34 = vpop.f32.mrb[11].mxu1 }
 0x483   : > { %v1446_v35 = vadd.f32 %v1445_v34, %v1368_v25 }
 0x485   : > { %v1449_v36 = vpop.f32.mrb[12].mxu1  ;;  %1462 = sbr.rel (%p1955_p0) target bundleno = 1166 (0x48e), region = 108  ;;  %1464 = vst [vmem:[#allocation3 + $0x8] sm:$0xff] (!%p1955_p0), %v1446_v35 }
 0x486   : > { %v1450_v37 = vadd.f32 %v1449_v36, %v1364_v24  ;;  %v1451_v38 = vpop.f32.mrb[13].mxu1 }
 0x487   : > { %v1452_v39 = vadd.f32 %v1451_v38, %v1368_v25 }
 0x489   : > { %v1455_v5 = vpop.f32.mrb[14].mxu1  ;;  %1465 = vst [vmem:[#allocation3 + $0x10] sm:$0xff] (!%p1955_p0), %v1452_v39 }
 0x48a   : > { %v1456_v40 = vadd.f32 %v1455_v5, %v1364_v24  ;;  %v1457_v41 = vpop.f32.mrb[15].mxu1 }
 0x48b   : > { %v1458_v42 = vadd.f32 %v1457_v41, %v1368_v25 }
 0x48d   : > { %1466 = vst [vmem:[#allocation3 + $0x18] sm:$0xff] %v1458_v42 }
 0x48e PF: > { %s3930_s17 = sld [smem:[#allocation33_spill]] }
 0x494   : > { %p1972_p6 = scmp.le.s32.totalorder %s3930_s17, 0 }
 0x495   : > { %v1471_v43 = vld [vmem:[#allocation3] sm:$0xff] (!%p1972_p6)  ;;  %v1472_v44 = vld [vmem:[#allocation3 + $0x8] sm:$0xff] (!%p1972_p6)  ;;  %v1473_v45 = vld [vmem:[#allocation3 + $0x10] sm:$0xff] (!%p1972_p6) }
 0x496   : > { %1470 = sbr.rel (%p1972_p6) target bundleno = 1181 (0x49d), region = 112  ;;  %v1475_v1 = vadd.f32 (!%p1972_p6), %v1471_v43, %v1440_v31  ;;  %v1476_v46 = vadd.f32 (!%p1972_p6), %v1472_v44, %v1446_v35  ;;  %v1477_v47 = vadd.f32 (!%p1972_p6), %v1473_v45, %v1452_v39  ;;  %v1474_v48 = vld [vmem:[#allocation3 + $0x18] sm:$0xff] (!%p1972_p6) }
 0x497   : > { %v1478_v49 = vadd.f32 (!%p1972_p6), %v1474_v48, %v1458_v42 }
 0x498   : > { %1479 = vst [vmem:[#allocation3] sm:$0xff] (!%p1972_p6), %v1475_v1  ;;  %1480 = vst [vmem:[#allocation3 + $0x8] sm:$0xff] (!%p1972_p6), %v1476_v46 }
 0x499   : > { %1481 = vst [vmem:[#allocation3 + $0x10] sm:$0xff] (!%p1972_p6), %v1477_v47  ;;  %1482 = vst [vmem:[#allocation3 + $0x18] sm:$0xff] (!%p1972_p6), %v1478_v49 }
 0x49d PF: > { %s3931_s19 = sld [smem:[#allocation33_spill]] }
 0x4a3   : > { %p1973_p12 = scmp.ge.s32.totalorder %s3931_s19, 2 }
 0x4a4   : > { %v1487_v50 = vld [vmem:[#allocation2 + $0x8] sm:$0xff] (!%p1973_p12)  ;;  %v1488_v51 = vld [vmem:[#allocation2 + $0x10] sm:$0xff] (!%p1973_p12) }
 0x4a5   : > { %1486 = sbr.rel (%p1973_p12) target bundleno = 1196 (0x4ac), region = 116  ;;  %v1495_v52 = vld [vmem:[#allocation2 + $0x28] sm:$0xff] (!%p1973_p12)  ;;  %v1489_v53 = vadd.f32 (!%p1973_p12), %v1487_v50, %v1438_v28  ;;  %v1490_v54 = vadd.f32 (!%p1973_p12), %v1488_v51, %v1444_v33  ;;  %v1496_v56 = vld [vmem:[#allocation2 + $0x30] sm:$0xff] (!%p1973_p12) }
 0x4a6   : > { %v1497_v55 = vadd.f32 (!%p1973_p12), %v1495_v52, %v1450_v37  ;;  %v1498_v57 = vadd.f32 (!%p1973_p12), %v1496_v56, %v1456_v40 }
 0x4a7   : > { %v1491_v58 = vmul.f32 (!%p1973_p12), %v3466_v6, %v1489_v53  ;;  %v1492_v59 = vmul.f32 (!%p1973_p12), %v3469_v7, %v1490_v54 }
 0x4a8   : > { %v1499_v60 = vmul.f32 (!%p1973_p12), %v3472_v8, %v1497_v55  ;;  %v1500_v61 = vmul.f32 (!%p1973_p12), %v3475_v9, %v1498_v57 }
 0x4a9   : > { %1493 = vst [vmem:[#allocation2 + $0x8] sm:$0xff] (!%p1973_p12), %v1491_v58  ;;  %1494 = vst [vmem:[#allocation2 + $0x10] sm:$0xff] (!%p1973_p12), %v1492_v59 }
 0x4aa   : > { %1501 = vst [vmem:[#allocation2 + $0x28] sm:$0xff] (!%p1973_p12), %v1499_v60  ;;  %1502 = vst [vmem:[#allocation2 + $0x30] sm:$0xff] (!%p1973_p12), %v1500_v61 }
 0x4ac PF: > { %s3932_s22 = sld [smem:[#allocation33_spill]] }
 0x4b2   : > { %p1974_p5 = scmp.ne.s32.totalorder %s3932_s22, 2 }
 0x4b3   : > { %v2542_v62 = vpack.i.bf16 (!%p1974_p5), %v3472_v8, %v3466_v6  ;;  %v1536_v63 = vld [vmem:[#allocation20 + $0x8] sm:$0xff] (!%p1974_p5)  ;;  %v1538_v0 = vld [vmem:[#allocation20 + $0x18] sm:$0xff] (!%p1974_p5)  ;;  %v1535_v2 = vld [vmem:[#allocation20] sm:$0xff] (!%p1974_p5)  ;;  %v2991_v3 = vmov (!%p1974_p5), 0   ;;  %v2547_v13 = vpack.i.bf16 (!%p1974_p5), %v3475_v9, %v3469_v7  ;;  %v2992_v7 = vmov (!%p1974_p5), 0.0  }
 0x4b4   : > { %1506 = sbr.rel (%p1974_p5) target bundleno = 1579 (0x62b), region = 120  ;;  %2541 = vset.pattern.permute.xlu0 (!%p1974_p5), %v2991_v3  ;;  %v2264_v4 = vpack.c.bf16 (!%p1974_p5), %v1538_v0, %v1536_v63  ;;  %v1537_v10 = vld [vmem:[#allocation20 + $0x10] sm:$0xff] (!%p1974_p5)  ;;  %v1540_v11 = vld [vmem:[#allocation20 + $0x28] sm:$0xff] (!%p1974_p5)  ;;  %v1542_v12 = vld [vmem:[#allocation20 + $0x38] sm:$0xff] (!%p1974_p5)  ;;  %1643 = vmatprep.mubr.f32.mxu0 (!%p1974_p5), %v2992_v7 }
 0x4b5   : > { %2543 = vperm.xlu0 (!%p1974_p5), %2541, %v2542_v62   ;;  %v2266_v14 = vpack.c.bf16 (!%p1974_p5), %v1537_v10, %v1535_v2  ;;  %v2268_v15 = vpack.c.bf16 (!%p1974_p5), %v1542_v12, %v1540_v11  ;;  %v1539_v16 = vld [vmem:[#allocation20 + $0x20] sm:$0xff] (!%p1974_p5)  ;;  %v1541_v17 = vld [vmem:[#allocation20 + $0x30] sm:$0xff] (!%p1974_p5)  ;;  %v1544_v18 = vld [vmem:[#allocation20 + $0x48] sm:$0xff] (!%p1974_p5)  ;;  %1655 = vmatprep.mubr.f32.mxu1 (!%p1974_p5), %v2992_v7 }
 0x4b6   : > { %2265 = vmatprep.subr.bf16.mxu0 (!%p1974_p5), %v2264_v4  ;;  %2336 = vmatprep.subr.bf16.mxu1 (!%p1974_p5), %v2264_v4  ;;  %v1546_v6 = vld [vmem:[#allocation20 + $0x58] sm:$0xff] (!%p1974_p5)  ;;  %v2270_v8 = vpack.c.bf16 (!%p1974_p5), %v1541_v17, %v1539_v16  ;;  %v1543_v20 = vld [vmem:[#allocation20 + $0x40] sm:$0xff] (!%p1974_p5)  ;;  %v1545_v21 = vld [vmem:[#allocation20 + $0x50] sm:$0xff] (!%p1974_p5) }
 0x4b7   : > { %2267 = vmatpush1.bf16.msra.mxu0 (!%p1974_p5), %v2266_v14  ;;  %2344 = vmatpush1.bf16.msra.mxu1 (!%p1974_p5), %v2266_v14  ;;  %v2272_v19 = vpack.c.bf16 (!%p1974_p5), %v1546_v6, %v1544_v18  ;;  %v1548_v22 = vld [vmem:[#allocation20 + $0x68] sm:$0xff] (!%p1974_p5)  ;;  %v1550_v23 = vld [vmem:[#allocation20 + $0x78] sm:$0xff] (!%p1974_p5)  ;;  %v2274_v9 = vpack.c.bf16 (!%p1974_p5), %v1545_v21, %v1543_v20  ;;  %v1547_v25 = vld [vmem:[#allocation20 + $0x60] sm:$0xff] (!%p1974_p5) }
 0x4b8   : > { %2269 = vmatprep.subr.bf16.mxu0 (!%p1974_p5), %v2268_v15  ;;  %2337 = vmatprep.subr.bf16.mxu1 (!%p1974_p5), %v2268_v15  ;;  %v2276_v24 = vpack.c.bf16 (!%p1974_p5), %v1550_v23, %v1548_v22  ;;  %v1549_v26 = vld [vmem:[#allocation20 + $0x70] sm:$0xff] (!%p1974_p5)  ;;  %v1552_v28 = vld [vmem:[#allocation20 + $0x88] sm:$0xff] (!%p1974_p5)  ;;  %v1554_v30 = vld [vmem:[#allocation20 + $0x98] sm:$0xff] (!%p1974_p5) }
 0x4b9   : > { %2548 = vperm.xlu0 (!%p1974_p5), %2541, %v2547_v13   ;;  %v2278_v31 = vpack.c.bf16 (!%p1974_p5), %v1549_v26, %v1547_v25  ;;  %v2280_v32 = vpack.c.bf16 (!%p1974_p5), %v1554_v30, %v1552_v28  ;;  %v1551_v33 = vld [vmem:[#allocation20 + $0x80] sm:$0xff] (!%p1974_p5)  ;;  %v1553_v34 = vld [vmem:[#allocation20 + $0x90] sm:$0xff] (!%p1974_p5)  ;;  %v1556_v35 = vld [vmem:[#allocation20 + $0xa8] sm:$0xff] (!%p1974_p5) }
 0x4ba   : > { %v1558_v36 = vld [vmem:[#allocation20 + $0xb8] sm:$0xff] (!%p1974_p5)  ;;  %v2282_v37 = vpack.c.bf16 (!%p1974_p5), %v1553_v34, %v1551_v33  ;;  %v1555_v39 = vld [vmem:[#allocation20 + $0xa0] sm:$0xff] (!%p1974_p5)  ;;  %v1557_v5 = vld [vmem:[#allocation20 + $0xb0] sm:$0xff] (!%p1974_p5) }
 0x4bb   : > { %2271 = vmatpush1.bf16.msra.mxu0 %v2270_v8  ;;  %2345 = vmatpush1.bf16.msra.mxu1 %v2270_v8  ;;  %v2284_v38 = vpack.c.bf16 %v1558_v36, %v1556_v35  ;;  %v1560_v40 = vld [vmem:[#allocation20 + $0xc8] sm:$0xff]  ;;  %v1562_v41 = vld [vmem:[#allocation20 + $0xd8] sm:$0xff]  ;;  %v2286_v42 = vpack.c.bf16 %v1557_v5, %v1555_v39  ;;  %v1559_v44 = vld [vmem:[#allocation20 + $0xc0] sm:$0xff] }
 0x4bc   : > { %2273 = vmatprep.subr.bf16.mxu0 %v2272_v19  ;;  %2338 = vmatprep.subr.bf16.mxu1 %v2272_v19  ;;  %v2288_v43 = vpack.c.bf16 %v1562_v41, %v1560_v40  ;;  %v1561_v45 = vld [vmem:[#allocation20 + $0xd0] sm:$0xff]  ;;  %v1564_v1 = vld [vmem:[#allocation20 + $0xe8] sm:$0xff]  ;;  %v1566_v46 = vld [vmem:[#allocation20 + $0xf8] sm:$0xff] }
 0x4bd   : > { %v2290_v47 = vpack.c.bf16 %v1561_v45, %v1559_v44  ;;  %v2292_v48 = vpack.c.bf16 %v1566_v46, %v1564_v1  ;;  %v1563_v49 = vld [vmem:[#allocation20 + $0xe0] sm:$0xff]  ;;  %v1565_v50 = vld [vmem:[#allocation20 + $0xf0] sm:$0xff] }
 0x4be   : > { %v2294_v51 = vpack.c.bf16 %v1565_v50, %v1563_v49  ;;  %v1507_v53 = vld [vmem:[#allocation3] sm:$0xff]  ;;  %v1509_v54 = vld [vmem:[#allocation3 + $0x10] sm:$0xff]  ;;  %v1508_v60 = vld [vmem:[#allocation3 + $0x8] sm:$0xff] }
 0x4bf   : > { %2275 = vmatpush1.bf16.msra.mxu0 %v2274_v9  ;;  %2346 = vmatpush1.bf16.msra.mxu1 %v2274_v9  ;;  %v1510_v61 = vld [vmem:[#allocation3 + $0x18] sm:$0xff]  ;;  %v1567_v3 = vld [vmem:[#allocation21] sm:$0x3]  ;;  %v1676_v35 = vld [vmem:[#allocation11] sm:$0xff] }
 0x4c0   : > { %2277 = vmatprep.subr.bf16.mxu0 %v2276_v24  ;;  %2339 = vmatprep.subr.bf16.mxu1 %v2276_v24  ;;  %v1572_v4 = vrot.slane %v1567_v3, %v3735_v27  ;;  %v1576_v10 = vrot.slane %v1567_v3, %v3739_v29  ;;  %v1678_v36 = vld [vmem:[#allocation11 + $0x10] sm:$0xff]  ;;  %v1677_v40 = vld [vmem:[#allocation11 + $0x8] sm:$0xff] }
 0x4c3   : > { %2279 = vmatpush1.bf16.msra.mxu0 %v2278_v31  ;;  %2347 = vmatpush1.bf16.msra.mxu1 %v2278_v31 }
 0x4c4   : > { %2281 = vmatprep.subr.bf16.mxu0 %v2280_v32  ;;  %2340 = vmatprep.subr.bf16.mxu1 %v2280_v32 }
 0x4c7   : > { %2283 = vmatpush1.bf16.msra.mxu0 %v2282_v37  ;;  %2348 = vmatpush1.bf16.msra.mxu1 %v2282_v37 }
 0x4c8   : > { %2285 = vmatprep.subr.bf16.mxu0 %v2284_v38  ;;  %2341 = vmatprep.subr.bf16.mxu1 %v2284_v38 }
 0x4cb   : > { %2287 = vmatpush1.bf16.msra.mxu0 %v2286_v42  ;;  %2349 = vmatpush1.bf16.msra.mxu1 %v2286_v42  ;;  %v1679_v42 = vld [vmem:[#allocation11 + $0x18] sm:$0xff] }
 0x4cc   : > { %2289 = vmatprep.subr.bf16.mxu0 %v2288_v43  ;;  %2342 = vmatprep.subr.bf16.mxu1 %v2288_v43 }
 0x4cf   : > { %2291 = vmatpush1.bf16.msra.mxu0 %v2290_v47  ;;  %2350 = vmatpush1.bf16.msra.mxu1 %v2290_v47 }
 0x4d0   : > { %2293 = vmatprep.subr.bf16.mxu0 %v2292_v48  ;;  %2343 = vmatprep.subr.bf16.mxu1 %v2292_v48 }
 0x4d3   : > { %2295 = vmatpush1.bf16.msra.mxu0 %v2294_v51  ;;  %2351 = vmatpush1.bf16.msra.mxu1 %v2294_v51 }
 0x534   : > { %v2544_v52 = vpop.permute.xlu0 %2543 }
 0x535   : > { %v3764_v55 = vunpack.i.h.bf16 %v2544_v52  ;;  %v3766_v56 = vunpack.i.l.bf16 %v2544_v52 }
 0x537   : > { %v1531_v57 = vmul.f32 %v3766_v56, %v1507_v53  ;;  %v1533_v58 = vmul.f32 %v3764_v55, %v1509_v54 }
 0x538   : > { %v2549_v59 = vpop.permute.xlu0 %2548 }
 0x539   : > { %v3770_v62 = vunpack.i.h.bf16 %v2549_v59  ;;  %v3772_v63 = vunpack.i.l.bf16 %v2549_v59  ;;  %1644 = vmatmul.mubr.f32.vlgmr.msra.gmra.mrb[0].mxu0 %v1531_v57  ;;  %1656 = vmatmul.mubr.f32.vlgmr.msra.gmra.mrb[0].mxu1 %v1533_v58 }
 0x53a   : > { %1649 = vmatprep.mubr.f32.mxu0 %v2992_v7  ;;  %1661 = vmatprep.mubr.f32.mxu1 %v2992_v7 }
 0x53b   : > { %v1532_v0 = vmul.f32 %v3772_v63, %v1508_v60  ;;  %v1534_v2 = vmul.f32 %v3770_v62, %v1510_v61 }
 0x53d   : > { %1650 = vmatmul.mubr.f32.gmra.mrb[2].mxu0 %v1532_v0  ;;  %1662 = vmatmul.mubr.f32.gmra.mrb[2].mxu1 %v1534_v2 }
 0x60c   : > { %v1645_v11 = vpop.f32.mrb[0].mxu0  ;;  %v1657_v12 = vpop.f32.mrb[0].mxu1 }
 0x60d   : > { %v1646_v13 = vadd.f32 %v1645_v11, %v1572_v4  ;;  %v1658_v14 = vadd.f32 %v1657_v12, %v1572_v4  ;;  %v1647_v15 = vpop.f32.mrb[1].mxu0  ;;  %v1659_v16 = vpop.f32.mrb[1].mxu1 }
 0x60e   : > { %v1648_v17 = vadd.f32 %v1647_v15, %v1576_v10  ;;  %v1660_v18 = vadd.f32 %v1659_v16, %v1576_v10 }
 0x60f   : > { %v1668_v6 = vmul.f32 %v3766_v56, %v1646_v13  ;;  %v1670_v8 = vmul.f32 %v3764_v55, %v1658_v14 }
 0x610   : > { %v1672_v19 = vmul.f32 %v3766_v56, %v1648_v17  ;;  %v1674_v20 = vmul.f32 %v3764_v55, %v1660_v18  ;;  %v1651_v21 = vpop.f32.mrb[2].mxu0  ;;  %v1663_v27 = vpop.f32.mrb[2].mxu1 }
 0x611   : > { %1704 = vst [vmem:[#allocation22 + $0x8] sm:$0xff] %v1668_v6  ;;  %1706 = vst [vmem:[#allocation22 + $0x38] sm:$0xff] %v1670_v8  ;;  %v1652_v29 = vadd.f32 %v1651_v21, %v1572_v4  ;;  %v1664_v22 = vadd.f32 %v1663_v27, %v1572_v4  ;;  %v1653_v23 = vpop.f32.mrb[3].mxu0  ;;  %v1665_v7 = vpop.f32.mrb[3].mxu1 }
 0x612   : > { %v1680_v9 = vmul.f32 1.442695, %v1672_v19  ;;  %1708 = vst [vmem:[#allocation22 + $0x10] sm:$0xff] %v1672_v19  ;;  %v1684_v24 = vmul.f32 1.442695, %v1674_v20  ;;  %1710 = vst [vmem:[#allocation22 + $0x40] sm:$0xff] %v1674_v20  ;;  %v1654_v25 = vadd.f32 %v1653_v23, %v1576_v10  ;;  %v1666_v26 = vadd.f32 %v1665_v7, %v1576_v10 }
 0x613   : > { %v1669_v28 = vmul.f32 %v3772_v63, %v1652_v29  ;;  %v1671_v30 = vmul.f32 %v3770_v62, %v1664_v22 }
 0x614   : > { %2552 = vpow2.f32 %v1680_v9  ;;  %v1673_v31 = vmul.f32 %v3772_v63, %v1654_v25  ;;  %v1675_v32 = vmul.f32 %v3770_v62, %v1666_v26 }
 0x615   : > { %2554 = vpow2.f32 %v1684_v24  ;;  %1705 = vst [vmem:[#allocation22 + $0x20] sm:$0xff] %v1669_v28  ;;  %1707 = vst [vmem:[#allocation22 + $0x50] sm:$0xff] %v1671_v30 }
 0x616   : > { %v1682_v33 = vmul.f32 1.442695, %v1673_v31  ;;  %1709 = vst [vmem:[#allocation22 + $0x28] sm:$0xff] %v1673_v31  ;;  %v1686_v34 = vmul.f32 1.442695, %v1675_v32  ;;  %1711 = vst [vmem:[#allocation22 + $0x58] sm:$0xff] %v1675_v32 }
 0x618   : > { %2556 = vpow2.f32 %v1682_v33 }
 0x619   : > { %2558 = vpow2.f32 %v1686_v34 }
 0x61e   : > { %v2553_v37 = vpop.eup %2552 }
 0x61f   : > { %v2555_v38 = vpop.eup %2554  ;;  %v1688_v39 = vmul.f32 %v2553_v37, %v1676_v35 }
 0x620   : > { %v1690_v5 = vmul.f32 %v2555_v38, %v1678_v36 }
 0x621   : > { %v1692_v41 = vadd.f32 %v1688_v39, %v1668_v6 }
 0x622   : > { %v2557_v43 = vpop.eup %2556  ;;  %v1694_v44 = vadd.f32 %v1690_v5, %v1670_v8 }
 0x623   : > { %v2559_v45 = vpop.eup %2558  ;;  %v1696_v1 = vmul.f32 %v3766_v56, %v1692_v41  ;;  %v1689_v46 = vmul.f32 %v2557_v43, %v1677_v40 }
 0x624   : > { %v1698_v47 = vmul.f32 %v3764_v55, %v1694_v44  ;;  %v1691_v48 = vmul.f32 %v2559_v45, %v1679_v42 }
 0x625   : > { %1700 = vst [vmem:[#allocation22] sm:$0xff] %v1696_v1  ;;  %v1693_v49 = vadd.f32 %v1689_v46, %v1669_v28 }
 0x626   : > { %1702 = vst [vmem:[#allocation22 + $0x30] sm:$0xff] %v1698_v47  ;;  %v1695_v50 = vadd.f32 %v1691_v48, %v1671_v30 }
 0x627   : > { %v1697_v51 = vmul.f32 %v3772_v63, %v1693_v49 }
 0x628   : > { %v1699_v52 = vmul.f32 %v3770_v62, %v1695_v50 }
 0x629   : > { %1701 = vst [vmem:[#allocation22 + $0x18] sm:$0xff] %v1697_v51 }
 0x62a   : > { %1703 = vst [vmem:[#allocation22 + $0x48] sm:$0xff] %v1699_v52 }
 0x62b PF: > { %p2436_p4 = scmp.eq.s32.totalorder %s3116_s1, 2  ;;  %s2993_s25 = smov [#allocation22]  }
 0x62c   : > { %s1722_s29 = sshll.u32 %s2993_s25, 4  ;;  %s1723_s29 = int_to_ptr.vmem [resolvable:$true] %s1722_s29 }
 0x62d   : > { %s2868_s27 = scalar_lea.vmem %s1723_s29, 1536  ;;  %p2875_p2 = scmp.lt.s32.totalorder %s1723_s29, %s1723_s29 }
 0x62e   : > { %p2869_p13 = scmp.ne.s32.totalorder %s1723_s29, %s2868_s27  ;;  %p2876_p3 = scmp.lt.s32.totalorder %s2868_s27, %s2868_s27 }
 0x630   : > { %p2870_p1 = pnand %p2869_p13, %p2436_p4  ;;  %p2877_p8 = por %p2876_p3, %p2875_p2 }
 0x632   : > { %p2871_p9 = pneg %p2870_p1 }
 0x634   : > { %p2878_p7 = pnand %p2877_p8, %p2871_p9 }
 0x636   : > { %2881 = shalt.err (!%p2878_p7)
}
 0x637   : > { %s3933_s30 = sld [smem:[#allocation42_spill]] }
 0x63d   : > { %s2882_s2 = scalar_lea.hbm %s3933_s30, 1536 }
 0x63e   : > { %p2883_p11 = scmp.ne.s32.totalorder %s3933_s30, %s2882_s2  ;;  %p2888_p6 = scmp.lt.u32.totalorder %s2882_s2, %s3933_s30 }
 0x640   : > { %p2884_p10 = pnand %p2883_p11, %p2436_p4 }
 0x642   : > { %p2885_p0 = pneg %p2884_p10 }
 0x644   : > { %p2890_p12 = pnand %p2888_p6, %p2885_p0 }
 0x646   : > { %2893 = shalt.err (!%p2890_p12)
}
 0x647   : > { %s2994_s20 = smov 384   ;;  %s2995_s13 = smov 24  }
 0x648   : > { %2388 = dma.vmem_to_hbm [thread:$0]  (%p2436_p4), %s1723_s29, 1536, %s3933_s30, [#allocation10], %s2994_s20, %s2994_s20, %s2995_s13  }
 0x649   : > { %2945 = dma.done.wait (%p2436_p4), [#allocation10], 1536  }
 0x64a   : > { %2947 = vsyncadd (%p2436_p4), [#allocation10], 4294965760 }
 0x64b PF: > { %s3934_s15 = sld [smem:[#allocation34_spill]]  ;;  %s3935_s0 = sld [smem:[#allocation31_spill]] }
 0x64c   : > { %s3936_s23 = sld [smem:[#allocation32_spill]]  ;;  %s3937_s24 = sld [smem:[#allocation37_spill]] }
 0x64d   : > { %s3938_s6 = sld [smem:[#allocation35_spill]]  ;;  %s3939_s25 = smov %s2966_s26 }
 0x651   : > { %s32_s27 = sadd.s32 1, %s3934_s15  }
 0x652   : > { %p29_p5 = scmp.ge.s32.totalorder %s32_s27, 5  }
 0x653   : > { %s3940_s26 = smov %s3938_s6 }
 0x654   :  { %31 = sbr.rel (!%p29_p5) target bundleno = 26 (0x1a), region = 186 }
 0x65b   :  { %1738 = vsyncpa [#allocation9], 1 }
 0x65c   :  { %1740 = vsyncpa [#allocation9 + $0x1], 1 }
 0x65d   :  { %1741 = vsyncpa [#allocation12], 1 }
 0x65e   :  { %1742 = vsyncpa [#allocation15], 1 }
 0x65f   :  { %1743 = vsyncpa [#allocation10], 1 }
 0x660   :  { %1745 = vsyncpa [#allocation10 + $0x1], 1 }

</bundles_post_ra>
